<compile_context>
chip_gen: v7x
topology: tpu7x:2x2x1
jax: 0.10.0
libtpu: 0.0.40
codegen_flags: <defaults>
</compile_context>

<pallas_src>
import jax
import jax.numpy as jnp
from jax import lax
from jax.experimental import pallas as pl
from jax.experimental.pallas import tpu as pltpu


def _log_sigmoid(x):
    # numerically stable log(sigmoid(x)) = min(x, 0) - log1p(exp(-|x|))
    return jnp.minimum(x, 0.0) - jnp.log1p(jnp.exp(-jnp.abs(x)))


def skipgram_kernel(pos_w_sm, pos_v_sm, neg_v_sm,   # scalar prefetch (SMEM)
                    w_ref, v_ref,                   # (V, D) tables, VMEM resident
                    out_ref,                        # (1, 8, 128) partial block
                    samp_ref,                       # VMEM (tile_b, K+1, D)
                    ctx_ref):                       # VMEM (tile_b, D)
    tile_b = samp_ref.shape[0]
    K = samp_ref.shape[1] - 1
    tile = pl.program_id(0)

    # ---- gather: dynamic-slice loads from the VMEM-resident tables ----------
    def gather_row(b, carry):
        gb = tile * tile_b + b                       # global batch index
        # context embedding  v_table[pos_v[gb]]  -> ctx row b
        ctx_ref[pl.ds(b, 1), :] = v_ref[pl.ds(pos_v_sm[gb], 1), :]
        # positive ("center") embedding w_table[pos_w[gb]] -> sample slot 0
        samp_ref[b, pl.ds(0, 1), :] = w_ref[pl.ds(pos_w_sm[gb], 1), :]
        # K negative-sample embeddings v_table[neg_v[gb, k]] -> slots 1..K
        for k in range(K):
            samp_ref[b, pl.ds(k + 1, 1), :] = (
                v_ref[pl.ds(neg_v_sm[gb * K + k], 1), :])
        return carry

    lax.fori_loop(0, tile_b, gather_row, 0, unroll=tile_b <= 16)

    # ---- compute: single mul + lane-reduce + logsigmoid path (VPU/XLU) ------
    samp = samp_ref[...]                                   # (tb, K+1, D)
    ctx = ctx_ref[...]                                     # (tb, D)
    prod = samp * ctx[:, None, :]                          # (tb, K+1, D)
    scores = jnp.sum(prod, axis=2)                         # (tb, K+1)
    col = lax.broadcasted_iota(jnp.int32, scores.shape, 1)
    signed = jnp.where(col == 0, scores, -scores)          # + for pos, - for neg
    ls = _log_sigmoid(signed)                              # (tb, K+1)
    partial = jnp.sum(ls)                                  # scalar partial loss
    # lane-dense (8, 128) store; host-side reduction reads element [0, 0].
    out_ref[...] = jnp.broadcast_to(partial, out_ref.shape).astype(jnp.float32)


def _pick_tile_b(batch, max_tile=256):
    # Biggest divisor of `batch` up to max_tile (raised from 8 per review).
    t = min(batch, max_tile)
    while batch % t:
        t -= 1
    return t


def skipgram_forward(w_table, v_table, pos_w, pos_v, neg_v, tile_b=None):
    V, D = w_table.shape
    B = pos_w.shape[0]
    K = neg_v.shape[1]
    if tile_b is None:
        tile_b = _pick_tile_b(B)
    assert B % tile_b == 0, "batch must be divisible by tile_b"
    num_tiles = B // tile_b

    # Full-array VMEM blocks with a constant index_map: the tables are DMA'd
    # once and stay resident across all grid steps.
    table_spec = pl.BlockSpec((V, D), lambda i, pw, pv, nv: (0, 0))

    grid_spec = pltpu.PrefetchScalarGridSpec(
        num_scalar_prefetch=3,
        grid=(num_tiles,),
        in_specs=[table_spec, table_spec],
        out_specs=pl.BlockSpec((1, 8, 128), lambda i, pw, pv, nv: (i, 0, 0)),
        scratch_shapes=[
            pltpu.VMEM((tile_b, K + 1, D), jnp.float32),   # gathered samples
            pltpu.VMEM((tile_b, D), jnp.float32),          # gathered contexts
        ],
    )

    partials = pl.pallas_call(
        skipgram_kernel,
        out_shape=jax.ShapeDtypeStruct((num_tiles, 8, 128), jnp.float32),
        grid_spec=grid_spec,
        compiler_params=pltpu.CompilerParams(
            dimension_semantics=("parallel",),   # tiles independent -> v7x 2-TC
        ),
    )(pos_w.astype(jnp.int32), pos_v.astype(jnp.int32),
      neg_v.reshape(-1).astype(jnp.int32),
      w_table.astype(jnp.float32), v_table.astype(jnp.float32))

    # each tile broadcast its scalar partial over its lane-dense block
    return -jnp.sum(partials[:, 0, 0])


def skipgram_forward_ref(w_table, v_table, pos_w, pos_v, neg_v):
    # Pure-JAX reference mirroring the PyTorch forward exactly.
    emb_w = jnp.take(w_table, pos_w, axis=0)
    emb_v = jnp.take(v_table, pos_v, axis=0)
    neg_emb_v = jnp.take(v_table, neg_v.reshape(-1), axis=0).reshape(
        neg_v.shape[0], neg_v.shape[1], -1)
    score = _log_sigmoid(jnp.sum(emb_w * emb_v, axis=1))
    neg_score = _log_sigmoid(-jnp.einsum("bkd,bd->bk", neg_emb_v, emb_v))
    return -(jnp.sum(score) + jnp.sum(neg_score))


if __name__ == "__main__":
    emb_size = 64          # vocabulary size V
    emb_dimension = 128    # embedding dim D (lane-aligned)
    batch = 8              # B
    num_neg = 8            # K negative samples per positive pair

    key = jax.random.PRNGKey(0)
    kw, kv, kpw, kpv, knv = jax.random.split(key, 5)

    initrange = 0.5 / emb_dimension
    # Module init: w ~ U(-initrange, initrange); v is zero-initialized.
    # Use a small uniform for v so the kernel compute is actually exercised.
    w_table = jax.random.uniform(
        kw, (emb_size, emb_dimension), jnp.float32, -initrange, initrange)
    v_table = jax.random.uniform(
        kv, (emb_size, emb_dimension), jnp.float32, -initrange, initrange)

    pos_w = jax.random.randint(kpw, (batch,), 0, emb_size, dtype=jnp.int32)
    pos_v = jax.random.randint(kpv, (batch,), 0, emb_size, dtype=jnp.int32)
    neg_v = jax.random.randint(knv, (batch, num_neg), 0, emb_size,
                               dtype=jnp.int32)

    # tile_b=4 -> grid of 2 tiles (even: balances v7x's two TensorCores)
    loss = jax.block_until_ready(
        skipgram_forward(w_table, v_table, pos_w, pos_v, neg_v, tile_b=4))
    loss_ref = jax.block_until_ready(
        skipgram_forward_ref(w_table, v_table, pos_w, pos_v, neg_v))

    assert jnp.allclose(loss, loss_ref, rtol=1e-5, atol=1e-5), (loss, loss_ref)
    print("KERNEL_OK")
</pallas_src>

<mosaic_0001>
module attributes {stable_mosaic.version = 11 : i64} {
  func.func @skipgram_kernel(%arg0: i32, %arg1: memref<8xi32, #tpu.memory_space<smem>>, %arg2: memref<8xi32, #tpu.memory_space<smem>>, %arg3: memref<64xi32, #tpu.memory_space<smem>>, %arg4: memref<64x128xf32, #tpu.memory_space<vmem>>, %arg5: memref<64x128xf32, #tpu.memory_space<vmem>>, %arg6: memref<1x8x128xf32, #tpu.memory_space<vmem>>, %arg7: memref<4x9x128xf32, #tpu.memory_space<vmem>>, %arg8: memref<4x128xf32, #tpu.memory_space<vmem>>) attributes {dimension_semantics = [#tpu.dimension_semantics<parallel>], iteration_bounds = array<i64: 2>, scalar_prefetch = 3 : i64, scratch_operands = 2 : i64, tpu.core_type = #tpu.core_type<tc>, window_params = [{pipeline_mode = #tpu.pipeline_mode<synchronous>, transform_indices = @transform_0, window_bounds = array<i64: 64, 128>}, {pipeline_mode = #tpu.pipeline_mode<synchronous>, transform_indices = @transform_1, window_bounds = array<i64: 64, 128>}, {transform_indices = @transform_2, window_bounds = array<i64: 1, 8, 128>}]} {
    %c0_i32 = arith.constant 0 : i32
    %c4_i32 = arith.constant 4 : i32
    %0 = arith.muli %arg0, %c4_i32 : i32
    %1 = arith.addi %0, %c0_i32 : i32
    %2 = arith.index_cast %1 : i32 to index
    %3 = memref.load %arg2[%2] : memref<8xi32, #tpu.memory_space<smem>>
    %4 = arith.index_cast %3 : i32 to index
    %c0 = arith.constant 0 : index
    %5 = vector.load %arg5[%4, %c0] : memref<64x128xf32, #tpu.memory_space<vmem>>, vector<1x128xf32>
    %6 = arith.index_cast %c0_i32 : i32 to index
    %c0_0 = arith.constant 0 : index
    %7 = vector.load %arg8[%6, %c0_0] : memref<4x128xf32, #tpu.memory_space<vmem>>, vector<1x128xf32>
    tpu.vector_store %arg8[%6, %c0_0], %5 {strides = array<i32>} : memref<4x128xf32, #tpu.memory_space<vmem>>, vector<1x128xf32>,
    %8 = arith.index_cast %1 : i32 to index
    %9 = memref.load %arg1[%8] : memref<8xi32, #tpu.memory_space<smem>>
    %10 = arith.index_cast %9 : i32 to index
    %c0_1 = arith.constant 0 : index
    %11 = vector.load %arg4[%10, %c0_1] : memref<64x128xf32, #tpu.memory_space<vmem>>, vector<1x128xf32>
    %12 = arith.index_cast %c0_i32 : i32 to index
    %c0_2 = arith.constant 0 : index
    %c0_3 = arith.constant 0 : index
    %13 = vector.load %arg7[%12, %c0_2, %c0_3] : memref<4x9x128xf32, #tpu.memory_space<vmem>>, vector<1x1x128xf32>
    %14 = vector.shape_cast %13 : vector<1x1x128xf32> to vector<1x128xf32>
    %15 = vector.shape_cast %11 : vector<1x128xf32> to vector<1x1x128xf32>
    tpu.vector_store %arg7[%12, %c0_2, %c0_3], %15 {strides = array<i32>} : memref<4x9x128xf32, #tpu.memory_space<vmem>>, vector<1x1x128xf32>,
    %c8_i32 = arith.constant 8 : i32
    %16 = arith.muli %1, %c8_i32 : i32
    %c0_i32_4 = arith.constant 0 : i32
    %17 = arith.addi %16, %c0_i32_4 : i32
    %18 = arith.index_cast %17 : i32 to index
    %19 = memref.load %arg3[%18] : memref<64xi32, #tpu.memory_space<smem>>
    %20 = arith.index_cast %19 : i32 to index
    %c0_5 = arith.constant 0 : index
    %21 = vector.load %arg5[%20, %c0_5] : memref<64x128xf32, #tpu.memory_space<vmem>>, vector<1x128xf32>
    %22 = arith.index_cast %c0_i32 : i32 to index
    %c1 = arith.constant 1 : index
    %c0_6 = arith.constant 0 : index
    %23 = vector.load %arg7[%22, %c1, %c0_6] : memref<4x9x128xf32, #tpu.memory_space<vmem>>, vector<1x1x128xf32>
    %24 = vector.shape_cast %23 : vector<1x1x128xf32> to vector<1x128xf32>
    %25 = vector.shape_cast %21 : vector<1x128xf32> to vector<1x1x128xf32>
    tpu.vector_store %arg7[%22, %c1, %c0_6], %25 {strides = array<i32>} : memref<4x9x128xf32, #tpu.memory_space<vmem>>, vector<1x1x128xf32>,
    %c8_i32_7 = arith.constant 8 : i32
    %26 = arith.muli %1, %c8_i32_7 : i32
    %c1_i32 = arith.constant 1 : i32
    %27 = arith.addi %26, %c1_i32 : i32
    %28 = arith.index_cast %27 : i32 to index
    %29 = memref.load %arg3[%28] : memref<64xi32, #tpu.memory_space<smem>>
    %30 = arith.index_cast %29 : i32 to index
    %c0_8 = arith.constant 0 : index
    %31 = vector.load %arg5[%30, %c0_8] : memref<64x128xf32, #tpu.memory_space<vmem>>, vector<1x128xf32>
    %32 = arith.index_cast %c0_i32 : i32 to index
    %c2 = arith.constant 2 : index
    %c0_9 = arith.constant 0 : index
    %33 = vector.load %arg7[%32, %c2, %c0_9] : memref<4x9x128xf32, #tpu.memory_space<vmem>>, vector<1x1x128xf32>
    %34 = vector.shape_cast %33 : vector<1x1x128xf32> to vector<1x128xf32>
    %35 = vector.shape_cast %31 : vector<1x128xf32> to vector<1x1x128xf32>
    tpu.vector_store %arg7[%32, %c2, %c0_9], %35 {strides = array<i32>} : memref<4x9x128xf32, #tpu.memory_space<vmem>>, vector<1x1x128xf32>,
    %c8_i32_10 = arith.constant 8 : i32
    %36 = arith.muli %1, %c8_i32_10 : i32
    %c2_i32 = arith.constant 2 : i32
    %37 = arith.addi %36, %c2_i32 : i32
    %38 = arith.index_cast %37 : i32 to index
    %39 = memref.load %arg3[%38] : memref<64xi32, #tpu.memory_space<smem>>
    %40 = arith.index_cast %39 : i32 to index
    %c0_11 = arith.constant 0 : index
    %41 = vector.load %arg5[%40, %c0_11] : memref<64x128xf32, #tpu.memory_space<vmem>>, vector<1x128xf32>
    %42 = arith.index_cast %c0_i32 : i32 to index
    %c3 = arith.constant 3 : index
    %c0_12 = arith.constant 0 : index
    %43 = vector.load %arg7[%42, %c3, %c0_12] : memref<4x9x128xf32, #tpu.memory_space<vmem>>, vector<1x1x128xf32>
    %44 = vector.shape_cast %43 : vector<1x1x128xf32> to vector<1x128xf32>
    %45 = vector.shape_cast %41 : vector<1x128xf32> to vector<1x1x128xf32>
    tpu.vector_store %arg7[%42, %c3, %c0_12], %45 {strides = array<i32>} : memref<4x9x128xf32, #tpu.memory_space<vmem>>, vector<1x1x128xf32>,
    %c8_i32_13 = arith.constant 8 : i32
    %46 = arith.muli %1, %c8_i32_13 : i32
    %c3_i32 = arith.constant 3 : i32
    %47 = arith.addi %46, %c3_i32 : i32
    %48 = arith.index_cast %47 : i32 to index
    %49 = memref.load %arg3[%48] : memref<64xi32, #tpu.memory_space<smem>>
    %50 = arith.index_cast %49 : i32 to index
    %c0_14 = arith.constant 0 : index
    %51 = vector.load %arg5[%50, %c0_14] : memref<64x128xf32, #tpu.memory_space<vmem>>, vector<1x128xf32>
    %52 = arith.index_cast %c0_i32 : i32 to index
    %c4 = arith.constant 4 : index
    %c0_15 = arith.constant 0 : index
    %53 = vector.load %arg7[%52, %c4, %c0_15] : memref<4x9x128xf32, #tpu.memory_space<vmem>>, vector<1x1x128xf32>
    %54 = vector.shape_cast %53 : vector<1x1x128xf32> to vector<1x128xf32>
    %55 = vector.shape_cast %51 : vector<1x128xf32> to vector<1x1x128xf32>
    tpu.vector_store %arg7[%52, %c4, %c0_15], %55 {strides = array<i32>} : memref<4x9x128xf32, #tpu.memory_space<vmem>>, vector<1x1x128xf32>,
    %c8_i32_16 = arith.constant 8 : i32
    %56 = arith.muli %1, %c8_i32_16 : i32
    %c4_i32_17 = arith.constant 4 : i32
    %57 = arith.addi %56, %c4_i32_17 : i32
    %58 = arith.index_cast %57 : i32 to index
    %59 = memref.load %arg3[%58] : memref<64xi32, #tpu.memory_space<smem>>
    %60 = arith.index_cast %59 : i32 to index
    %c0_18 = arith.constant 0 : index
    %61 = vector.load %arg5[%60, %c0_18] : memref<64x128xf32, #tpu.memory_space<vmem>>, vector<1x128xf32>
    %62 = arith.index_cast %c0_i32 : i32 to index
    %c5 = arith.constant 5 : index
    %c0_19 = arith.constant 0 : index
    %63 = vector.load %arg7[%62, %c5, %c0_19] : memref<4x9x128xf32, #tpu.memory_space<vmem>>, vector<1x1x128xf32>
    %64 = vector.shape_cast %63 : vector<1x1x128xf32> to vector<1x128xf32>
    %65 = vector.shape_cast %61 : vector<1x128xf32> to vector<1x1x128xf32>
    tpu.vector_store %arg7[%62, %c5, %c0_19], %65 {strides = array<i32>} : memref<4x9x128xf32, #tpu.memory_space<vmem>>, vector<1x1x128xf32>,
    %c8_i32_20 = arith.constant 8 : i32
    %66 = arith.muli %1, %c8_i32_20 : i32
    %c5_i32 = arith.constant 5 : i32
    %67 = arith.addi %66, %c5_i32 : i32
    %68 = arith.index_cast %67 : i32 to index
    %69 = memref.load %arg3[%68] : memref<64xi32, #tpu.memory_space<smem>>
    %70 = arith.index_cast %69 : i32 to index
    %c0_21 = arith.constant 0 : index
    %71 = vector.load %arg5[%70, %c0_21] : memref<64x128xf32, #tpu.memory_space<vmem>>, vector<1x128xf32>
    %72 = arith.index_cast %c0_i32 : i32 to index
    %c6 = arith.constant 6 : index
    %c0_22 = arith.constant 0 : index
    %73 = vector.load %arg7[%72, %c6, %c0_22] : memref<4x9x128xf32, #tpu.memory_space<vmem>>, vector<1x1x128xf32>
    %74 = vector.shape_cast %73 : vector<1x1x128xf32> to vector<1x128xf32>
    %75 = vector.shape_cast %71 : vector<1x128xf32> to vector<1x1x128xf32>
    tpu.vector_store %arg7[%72, %c6, %c0_22], %75 {strides = array<i32>} : memref<4x9x128xf32, #tpu.memory_space<vmem>>, vector<1x1x128xf32>,
    %c8_i32_23 = arith.constant 8 : i32
    %76 = arith.muli %1, %c8_i32_23 : i32
    %c6_i32 = arith.constant 6 : i32
    %77 = arith.addi %76, %c6_i32 : i32
    %78 = arith.index_cast %77 : i32 to index
    %79 = memref.load %arg3[%78] : memref<64xi32, #tpu.memory_space<smem>>
    %80 = arith.index_cast %79 : i32 to index
    %c0_24 = arith.constant 0 : index
    %81 = vector.load %arg5[%80, %c0_24] : memref<64x128xf32, #tpu.memory_space<vmem>>, vector<1x128xf32>
    %82 = arith.index_cast %c0_i32 : i32 to index
    %c7 = arith.constant 7 : index
    %c0_25 = arith.constant 0 : index
    %83 = vector.load %arg7[%82, %c7, %c0_25] : memref<4x9x128xf32, #tpu.memory_space<vmem>>, vector<1x1x128xf32>
    %84 = vector.shape_cast %83 : vector<1x1x128xf32> to vector<1x128xf32>
    %85 = vector.shape_cast %81 : vector<1x128xf32> to vector<1x1x128xf32>
    tpu.vector_store %arg7[%82, %c7, %c0_25], %85 {strides = array<i32>} : memref<4x9x128xf32, #tpu.memory_space<vmem>>, vector<1x1x128xf32>,
    %c8_i32_26 = arith.constant 8 : i32
    %86 = arith.muli %1, %c8_i32_26 : i32
    %c7_i32 = arith.constant 7 : i32
    %87 = arith.addi %86, %c7_i32 : i32
    %88 = arith.index_cast %87 : i32 to index
    %89 = memref.load %arg3[%88] : memref<64xi32, #tpu.memory_space<smem>>
    %90 = arith.index_cast %89 : i32 to index
    %c0_27 = arith.constant 0 : index
    %91 = vector.load %arg5[%90, %c0_27] : memref<64x128xf32, #tpu.memory_space<vmem>>, vector<1x128xf32>
    %92 = arith.index_cast %c0_i32 : i32 to index
    %c8 = arith.constant 8 : index
    %c0_28 = arith.constant 0 : index
    %93 = vector.load %arg7[%92, %c8, %c0_28] : memref<4x9x128xf32, #tpu.memory_space<vmem>>, vector<1x1x128xf32>
    %94 = vector.shape_cast %93 : vector<1x1x128xf32> to vector<1x128xf32>
    %95 = vector.shape_cast %91 : vector<1x128xf32> to vector<1x1x128xf32>
    tpu.vector_store %arg7[%92, %c8, %c0_28], %95 {strides = array<i32>} : memref<4x9x128xf32, #tpu.memory_space<vmem>>, vector<1x1x128xf32>,
    %c1_i32_29 = arith.constant 1 : i32
    %c4_i32_30 = arith.constant 4 : i32
    %96 = arith.muli %arg0, %c4_i32_30 : i32
    %97 = arith.addi %96, %c1_i32_29 : i32
    %98 = arith.index_cast %97 : i32 to index
    %99 = memref.load %arg2[%98] : memref<8xi32, #tpu.memory_space<smem>>
    %100 = arith.index_cast %99 : i32 to index
    %c0_31 = arith.constant 0 : index
    %101 = vector.load %arg5[%100, %c0_31] : memref<64x128xf32, #tpu.memory_space<vmem>>, vector<1x128xf32>
    %102 = arith.index_cast %c1_i32_29 : i32 to index
    %c0_32 = arith.constant 0 : index
    %103 = vector.load %arg8[%102, %c0_32] : memref<4x128xf32, #tpu.memory_space<vmem>>, vector<1x128xf32>
    tpu.vector_store %arg8[%102, %c0_32], %101 {strides = array<i32>} : memref<4x128xf32, #tpu.memory_space<vmem>>, vector<1x128xf32>,
    %104 = arith.index_cast %97 : i32 to index
    %105 = memref.load %arg1[%104] : memref<8xi32, #tpu.memory_space<smem>>
    %106 = arith.index_cast %105 : i32 to index
    %c0_33 = arith.constant 0 : index
    %107 = vector.load %arg4[%106, %c0_33] : memref<64x128xf32, #tpu.memory_space<vmem>>, vector<1x128xf32>
    %108 = arith.index_cast %c1_i32_29 : i32 to index
    %c0_34 = arith.constant 0 : index
    %c0_35 = arith.constant 0 : index
    %109 = vector.load %arg7[%108, %c0_34, %c0_35] : memref<4x9x128xf32, #tpu.memory_space<vmem>>, vector<1x1x128xf32>
    %110 = vector.shape_cast %109 : vector<1x1x128xf32> to vector<1x128xf32>
    %111 = vector.shape_cast %107 : vector<1x128xf32> to vector<1x1x128xf32>
    tpu.vector_store %arg7[%108, %c0_34, %c0_35], %111 {strides = array<i32>} : memref<4x9x128xf32, #tpu.memory_space<vmem>>, vector<1x1x128xf32>,
    %c8_i32_36 = arith.constant 8 : i32
    %112 = arith.muli %97, %c8_i32_36 : i32
    %c0_i32_37 = arith.constant 0 : i32
    %113 = arith.addi %112, %c0_i32_37 : i32
    %114 = arith.index_cast %113 : i32 to index
    %115 = memref.load %arg3[%114] : memref<64xi32, #tpu.memory_space<smem>>
    %116 = arith.index_cast %115 : i32 to index
    %c0_38 = arith.constant 0 : index
    %117 = vector.load %arg5[%116, %c0_38] : memref<64x128xf32, #tpu.memory_space<vmem>>, vector<1x128xf32>
    %118 = arith.index_cast %c1_i32_29 : i32 to index
    %c1_39 = arith.constant 1 : index
    %c0_40 = arith.constant 0 : index
    %119 = vector.load %arg7[%118, %c1_39, %c0_40] : memref<4x9x128xf32, #tpu.memory_space<vmem>>, vector<1x1x128xf32>
    %120 = vector.shape_cast %119 : vector<1x1x128xf32> to vector<1x128xf32>
    %121 = vector.shape_cast %117 : vector<1x128xf32> to vector<1x1x128xf32>
    tpu.vector_store %arg7[%118, %c1_39, %c0_40], %121 {strides = array<i32>} : memref<4x9x128xf32, #tpu.memory_space<vmem>>, vector<1x1x128xf32>,
    %c8_i32_41 = arith.constant 8 : i32
    %122 = arith.muli %97, %c8_i32_41 : i32
    %c1_i32_42 = arith.constant 1 : i32
    %123 = arith.addi %122, %c1_i32_42 : i32
    %124 = arith.index_cast %123 : i32 to index
    %125 = memref.load %arg3[%124] : memref<64xi32, #tpu.memory_space<smem>>
    %126 = arith.index_cast %125 : i32 to index
    %c0_43 = arith.constant 0 : index
    %127 = vector.load %arg5[%126, %c0_43] : memref<64x128xf32, #tpu.memory_space<vmem>>, vector<1x128xf32>
    %128 = arith.index_cast %c1_i32_29 : i32 to index
    %c2_44 = arith.constant 2 : index
    %c0_45 = arith.constant 0 : index
    %129 = vector.load %arg7[%128, %c2_44, %c0_45] : memref<4x9x128xf32, #tpu.memory_space<vmem>>, vector<1x1x128xf32>
    %130 = vector.shape_cast %129 : vector<1x1x128xf32> to vector<1x128xf32>
    %131 = vector.shape_cast %127 : vector<1x128xf32> to vector<1x1x128xf32>
    tpu.vector_store %arg7[%128, %c2_44, %c0_45], %131 {strides = array<i32>} : memref<4x9x128xf32, #tpu.memory_space<vmem>>, vector<1x1x128xf32>,
    %c8_i32_46 = arith.constant 8 : i32
    %132 = arith.muli %97, %c8_i32_46 : i32
    %c2_i32_47 = arith.constant 2 : i32
    %133 = arith.addi %132, %c2_i32_47 : i32
    %134 = arith.index_cast %133 : i32 to index
    %135 = memref.load %arg3[%134] : memref<64xi32, #tpu.memory_space<smem>>
    %136 = arith.index_cast %135 : i32 to index
    %c0_48 = arith.constant 0 : index
    %137 = vector.load %arg5[%136, %c0_48] : memref<64x128xf32, #tpu.memory_space<vmem>>, vector<1x128xf32>
    %138 = arith.index_cast %c1_i32_29 : i32 to index
    %c3_49 = arith.constant 3 : index
    %c0_50 = arith.constant 0 : index
    %139 = vector.load %arg7[%138, %c3_49, %c0_50] : memref<4x9x128xf32, #tpu.memory_space<vmem>>, vector<1x1x128xf32>
    %140 = vector.shape_cast %139 : vector<1x1x128xf32> to vector<1x128xf32>
    %141 = vector.shape_cast %137 : vector<1x128xf32> to vector<1x1x128xf32>
    tpu.vector_store %arg7[%138, %c3_49, %c0_50], %141 {strides = array<i32>} : memref<4x9x128xf32, #tpu.memory_space<vmem>>, vector<1x1x128xf32>,
    %c8_i32_51 = arith.constant 8 : i32
    %142 = arith.muli %97, %c8_i32_51 : i32
    %c3_i32_52 = arith.constant 3 : i32
    %143 = arith.addi %142, %c3_i32_52 : i32
    %144 = arith.index_cast %143 : i32 to index
    %145 = memref.load %arg3[%144] : memref<64xi32, #tpu.memory_space<smem>>
    %146 = arith.index_cast %145 : i32 to index
    %c0_53 = arith.constant 0 : index
    %147 = vector.load %arg5[%146, %c0_53] : memref<64x128xf32, #tpu.memory_space<vmem>>, vector<1x128xf32>
    %148 = arith.index_cast %c1_i32_29 : i32 to index
    %c4_54 = arith.constant 4 : index
    %c0_55 = arith.constant 0 : index
    %149 = vector.load %arg7[%148, %c4_54, %c0_55] : memref<4x9x128xf32, #tpu.memory_space<vmem>>, vector<1x1x128xf32>
    %150 = vector.shape_cast %149 : vector<1x1x128xf32> to vector<1x128xf32>
    %151 = vector.shape_cast %147 : vector<1x128xf32> to vector<1x1x128xf32>
    tpu.vector_store %arg7[%148, %c4_54, %c0_55], %151 {strides = array<i32>} : memref<4x9x128xf32, #tpu.memory_space<vmem>>, vector<1x1x128xf32>,
    %c8_i32_56 = arith.constant 8 : i32
    %152 = arith.muli %97, %c8_i32_56 : i32
    %c4_i32_57 = arith.constant 4 : i32
    %153 = arith.addi %152, %c4_i32_57 : i32
    %154 = arith.index_cast %153 : i32 to index
    %155 = memref.load %arg3[%154] : memref<64xi32, #tpu.memory_space<smem>>
    %156 = arith.index_cast %155 : i32 to index
    %c0_58 = arith.constant 0 : index
    %157 = vector.load %arg5[%156, %c0_58] : memref<64x128xf32, #tpu.memory_space<vmem>>, vector<1x128xf32>
    %158 = arith.index_cast %c1_i32_29 : i32 to index
    %c5_59 = arith.constant 5 : index
    %c0_60 = arith.constant 0 : index
    %159 = vector.load %arg7[%158, %c5_59, %c0_60] : memref<4x9x128xf32, #tpu.memory_space<vmem>>, vector<1x1x128xf32>
    %160 = vector.shape_cast %159 : vector<1x1x128xf32> to vector<1x128xf32>
    %161 = vector.shape_cast %157 : vector<1x128xf32> to vector<1x1x128xf32>
    tpu.vector_store %arg7[%158, %c5_59, %c0_60], %161 {strides = array<i32>} : memref<4x9x128xf32, #tpu.memory_space<vmem>>, vector<1x1x128xf32>,
    %c8_i32_61 = arith.constant 8 : i32
    %162 = arith.muli %97, %c8_i32_61 : i32
    %c5_i32_62 = arith.constant 5 : i32
    %163 = arith.addi %162, %c5_i32_62 : i32
    %164 = arith.index_cast %163 : i32 to index
    %165 = memref.load %arg3[%164] : memref<64xi32, #tpu.memory_space<smem>>
    %166 = arith.index_cast %165 : i32 to index
    %c0_63 = arith.constant 0 : index
    %167 = vector.load %arg5[%166, %c0_63] : memref<64x128xf32, #tpu.memory_space<vmem>>, vector<1x128xf32>
    %168 = arith.index_cast %c1_i32_29 : i32 to index
    %c6_64 = arith.constant 6 : index
    %c0_65 = arith.constant 0 : index
    %169 = vector.load %arg7[%168, %c6_64, %c0_65] : memref<4x9x128xf32, #tpu.memory_space<vmem>>, vector<1x1x128xf32>
    %170 = vector.shape_cast %169 : vector<1x1x128xf32> to vector<1x128xf32>
    %171 = vector.shape_cast %167 : vector<1x128xf32> to vector<1x1x128xf32>
    tpu.vector_store %arg7[%168, %c6_64, %c0_65], %171 {strides = array<i32>} : memref<4x9x128xf32, #tpu.memory_space<vmem>>, vector<1x1x128xf32>,
    %c8_i32_66 = arith.constant 8 : i32
    %172 = arith.muli %97, %c8_i32_66 : i32
    %c6_i32_67 = arith.constant 6 : i32
    %173 = arith.addi %172, %c6_i32_67 : i32
    %174 = arith.index_cast %173 : i32 to index
    %175 = memref.load %arg3[%174] : memref<64xi32, #tpu.memory_space<smem>>
    %176 = arith.index_cast %175 : i32 to index
    %c0_68 = arith.constant 0 : index
    %177 = vector.load %arg5[%176, %c0_68] : memref<64x128xf32, #tpu.memory_space<vmem>>, vector<1x128xf32>
    %178 = arith.index_cast %c1_i32_29 : i32 to index
    %c7_69 = arith.constant 7 : index
    %c0_70 = arith.constant 0 : index
    %179 = vector.load %arg7[%178, %c7_69, %c0_70] : memref<4x9x128xf32, #tpu.memory_space<vmem>>, vector<1x1x128xf32>
    %180 = vector.shape_cast %179 : vector<1x1x128xf32> to vector<1x128xf32>
    %181 = vector.shape_cast %177 : vector<1x128xf32> to vector<1x1x128xf32>
    tpu.vector_store %arg7[%178, %c7_69, %c0_70], %181 {strides = array<i32>} : memref<4x9x128xf32, #tpu.memory_space<vmem>>, vector<1x1x128xf32>,
    %c8_i32_71 = arith.constant 8 : i32
    %182 = arith.muli %97, %c8_i32_71 : i32
    %c7_i32_72 = arith.constant 7 : i32
    %183 = arith.addi %182, %c7_i32_72 : i32
    %184 = arith.index_cast %183 : i32 to index
    %185 = memref.load %arg3[%184] : memref<64xi32, #tpu.memory_space<smem>>
    %186 = arith.index_cast %185 : i32 to index
    %c0_73 = arith.constant 0 : index
    %187 = vector.load %arg5[%186, %c0_73] : memref<64x128xf32, #tpu.memory_space<vmem>>, vector<1x128xf32>
    %188 = arith.index_cast %c1_i32_29 : i32 to index
    %c8_74 = arith.constant 8 : index
    %c0_75 = arith.constant 0 : index
    %189 = vector.load %arg7[%188, %c8_74, %c0_75] : memref<4x9x128xf32, #tpu.memory_space<vmem>>, vector<1x1x128xf32>
    %190 = vector.shape_cast %189 : vector<1x1x128xf32> to vector<1x128xf32>
    %191 = vector.shape_cast %187 : vector<1x128xf32> to vector<1x1x128xf32>
    tpu.vector_store %arg7[%188, %c8_74, %c0_75], %191 {strides = array<i32>} : memref<4x9x128xf32, #tpu.memory_space<vmem>>, vector<1x1x128xf32>,
    %c2_i32_76 = arith.constant 2 : i32
    %c4_i32_77 = arith.constant 4 : i32
    %192 = arith.muli %arg0, %c4_i32_77 : i32
    %193 = arith.addi %192, %c2_i32_76 : i32
    %194 = arith.index_cast %193 : i32 to index
    %195 = memref.load %arg2[%194] : memref<8xi32, #tpu.memory_space<smem>>
    %196 = arith.index_cast %195 : i32 to index
    %c0_78 = arith.constant 0 : index
    %197 = vector.load %arg5[%196, %c0_78] : memref<64x128xf32, #tpu.memory_space<vmem>>, vector<1x128xf32>
    %198 = arith.index_cast %c2_i32_76 : i32 to index
    %c0_79 = arith.constant 0 : index
    %199 = vector.load %arg8[%198, %c0_79] : memref<4x128xf32, #tpu.memory_space<vmem>>, vector<1x128xf32>
    tpu.vector_store %arg8[%198, %c0_79], %197 {strides = array<i32>} : memref<4x128xf32, #tpu.memory_space<vmem>>, vector<1x128xf32>,
    %200 = arith.index_cast %193 : i32 to index
    %201 = memref.load %arg1[%200] : memref<8xi32, #tpu.memory_space<smem>>
    %202 = arith.index_cast %201 : i32 to index
    %c0_80 = arith.constant 0 : index
    %203 = vector.load %arg4[%202, %c0_80] : memref<64x128xf32, #tpu.memory_space<vmem>>, vector<1x128xf32>
    %204 = arith.index_cast %c2_i32_76 : i32 to index
    %c0_81 = arith.constant 0 : index
    %c0_82 = arith.constant 0 : index
    %205 = vector.load %arg7[%204, %c0_81, %c0_82] : memref<4x9x128xf32, #tpu.memory_space<vmem>>, vector<1x1x128xf32>
    %206 = vector.shape_cast %205 : vector<1x1x128xf32> to vector<1x128xf32>
    %207 = vector.shape_cast %203 : vector<1x128xf32> to vector<1x1x128xf32>
    tpu.vector_store %arg7[%204, %c0_81, %c0_82], %207 {strides = array<i32>} : memref<4x9x128xf32, #tpu.memory_space<vmem>>, vector<1x1x128xf32>,
    %c8_i32_83 = arith.constant 8 : i32
    %208 = arith.muli %193, %c8_i32_83 : i32
    %c0_i32_84 = arith.constant 0 : i32
    %209 = arith.addi %208, %c0_i32_84 : i32
    %210 = arith.index_cast %209 : i32 to index
    %211 = memref.load %arg3[%210] : memref<64xi32, #tpu.memory_space<smem>>
    %212 = arith.index_cast %211 : i32 to index
    %c0_85 = arith.constant 0 : index
    %213 = vector.load %arg5[%212, %c0_85] : memref<64x128xf32, #tpu.memory_space<vmem>>, vector<1x128xf32>
    %214 = arith.index_cast %c2_i32_76 : i32 to index
    %c1_86 = arith.constant 1 : index
    %c0_87 = arith.constant 0 : index
    %215 = vector.load %arg7[%214, %c1_86, %c0_87] : memref<4x9x128xf32, #tpu.memory_space<vmem>>, vector<1x1x128xf32>
    %216 = vector.shape_cast %215 : vector<1x1x128xf32> to vector<1x128xf32>
    %217 = vector.shape_cast %213 : vector<1x128xf32> to vector<1x1x128xf32>
    tpu.vector_store %arg7[%214, %c1_86, %c0_87], %217 {strides = array<i32>} : memref<4x9x128xf32, #tpu.memory_space<vmem>>, vector<1x1x128xf32>,
    %c8_i32_88 = arith.constant 8 : i32
    %218 = arith.muli %193, %c8_i32_88 : i32
    %c1_i32_89 = arith.constant 1 : i32
    %219 = arith.addi %218, %c1_i32_89 : i32
    %220 = arith.index_cast %219 : i32 to index
    %221 = memref.load %arg3[%220] : memref<64xi32, #tpu.memory_space<smem>>
    %222 = arith.index_cast %221 : i32 to index
    %c0_90 = arith.constant 0 : index
    %223 = vector.load %arg5[%222, %c0_90] : memref<64x128xf32, #tpu.memory_space<vmem>>, vector<1x128xf32>
    %224 = arith.index_cast %c2_i32_76 : i32 to index
    %c2_91 = arith.constant 2 : index
    %c0_92 = arith.constant 0 : index
    %225 = vector.load %arg7[%224, %c2_91, %c0_92] : memref<4x9x128xf32, #tpu.memory_space<vmem>>, vector<1x1x128xf32>
    %226 = vector.shape_cast %225 : vector<1x1x128xf32> to vector<1x128xf32>
    %227 = vector.shape_cast %223 : vector<1x128xf32> to vector<1x1x128xf32>
    tpu.vector_store %arg7[%224, %c2_91, %c0_92], %227 {strides = array<i32>} : memref<4x9x128xf32, #tpu.memory_space<vmem>>, vector<1x1x128xf32>,
    %c8_i32_93 = arith.constant 8 : i32
    %228 = arith.muli %193, %c8_i32_93 : i32
    %c2_i32_94 = arith.constant 2 : i32
    %229 = arith.addi %228, %c2_i32_94 : i32
    %230 = arith.index_cast %229 : i32 to index
    %231 = memref.load %arg3[%230] : memref<64xi32, #tpu.memory_space<smem>>
    %232 = arith.index_cast %231 : i32 to index
    %c0_95 = arith.constant 0 : index
    %233 = vector.load %arg5[%232, %c0_95] : memref<64x128xf32, #tpu.memory_space<vmem>>, vector<1x128xf32>
    %234 = arith.index_cast %c2_i32_76 : i32 to index
    %c3_96 = arith.constant 3 : index
    %c0_97 = arith.constant 0 : index
    %235 = vector.load %arg7[%234, %c3_96, %c0_97] : memref<4x9x128xf32, #tpu.memory_space<vmem>>, vector<1x1x128xf32>
    %236 = vector.shape_cast %235 : vector<1x1x128xf32> to vector<1x128xf32>
    %237 = vector.shape_cast %233 : vector<1x128xf32> to vector<1x1x128xf32>
    tpu.vector_store %arg7[%234, %c3_96, %c0_97], %237 {strides = array<i32>} : memref<4x9x128xf32, #tpu.memory_space<vmem>>, vector<1x1x128xf32>,
    %c8_i32_98 = arith.constant 8 : i32
    %238 = arith.muli %193, %c8_i32_98 : i32
    %c3_i32_99 = arith.constant 3 : i32
    %239 = arith.addi %238, %c3_i32_99 : i32
    %240 = arith.index_cast %239 : i32 to index
    %241 = memref.load %arg3[%240] : memref<64xi32, #tpu.memory_space<smem>>
    %242 = arith.index_cast %241 : i32 to index
    %c0_100 = arith.constant 0 : index
    %243 = vector.load %arg5[%242, %c0_100] : memref<64x128xf32, #tpu.memory_space<vmem>>, vector<1x128xf32>
    %244 = arith.index_cast %c2_i32_76 : i32 to index
    %c4_101 = arith.constant 4 : index
    %c0_102 = arith.constant 0 : index
    %245 = vector.load %arg7[%244, %c4_101, %c0_102] : memref<4x9x128xf32, #tpu.memory_space<vmem>>, vector<1x1x128xf32>
    %246 = vector.shape_cast %245 : vector<1x1x128xf32> to vector<1x128xf32>
    %247 = vector.shape_cast %243 : vector<1x128xf32> to vector<1x1x128xf32>
    tpu.vector_store %arg7[%244, %c4_101, %c0_102], %247 {strides = array<i32>} : memref<4x9x128xf32, #tpu.memory_space<vmem>>, vector<1x1x128xf32>,
    %c8_i32_103 = arith.constant 8 : i32
    %248 = arith.muli %193, %c8_i32_103 : i32
    %c4_i32_104 = arith.constant 4 : i32
    %249 = arith.addi %248, %c4_i32_104 : i32
    %250 = arith.index_cast %249 : i32 to index
    %251 = memref.load %arg3[%250] : memref<64xi32, #tpu.memory_space<smem>>
    %252 = arith.index_cast %251 : i32 to index
    %c0_105 = arith.constant 0 : index
    %253 = vector.load %arg5[%252, %c0_105] : memref<64x128xf32, #tpu.memory_space<vmem>>, vector<1x128xf32>
    %254 = arith.index_cast %c2_i32_76 : i32 to index
    %c5_106 = arith.constant 5 : index
    %c0_107 = arith.constant 0 : index
    %255 = vector.load %arg7[%254, %c5_106, %c0_107] : memref<4x9x128xf32, #tpu.memory_space<vmem>>, vector<1x1x128xf32>
    %256 = vector.shape_cast %255 : vector<1x1x128xf32> to vector<1x128xf32>
    %257 = vector.shape_cast %253 : vector<1x128xf32> to vector<1x1x128xf32>
    tpu.vector_store %arg7[%254, %c5_106, %c0_107], %257 {strides = array<i32>} : memref<4x9x128xf32, #tpu.memory_space<vmem>>, vector<1x1x128xf32>,
    %c8_i32_108 = arith.constant 8 : i32
    %258 = arith.muli %193, %c8_i32_108 : i32
    %c5_i32_109 = arith.constant 5 : i32
    %259 = arith.addi %258, %c5_i32_109 : i32
    %260 = arith.index_cast %259 : i32 to index
    %261 = memref.load %arg3[%260] : memref<64xi32, #tpu.memory_space<smem>>
    %262 = arith.index_cast %261 : i32 to index
    %c0_110 = arith.constant 0 : index
    %263 = vector.load %arg5[%262, %c0_110] : memref<64x128xf32, #tpu.memory_space<vmem>>, vector<1x128xf32>
    %264 = arith.index_cast %c2_i32_76 : i32 to index
    %c6_111 = arith.constant 6 : index
    %c0_112 = arith.constant 0 : index
    %265 = vector.load %arg7[%264, %c6_111, %c0_112] : memref<4x9x128xf32, #tpu.memory_space<vmem>>, vector<1x1x128xf32>
    %266 = vector.shape_cast %265 : vector<1x1x128xf32> to vector<1x128xf32>
    %267 = vector.shape_cast %263 : vector<1x128xf32> to vector<1x1x128xf32>
    tpu.vector_store %arg7[%264, %c6_111, %c0_112], %267 {strides = array<i32>} : memref<4x9x128xf32, #tpu.memory_space<vmem>>, vector<1x1x128xf32>,
    %c8_i32_113 = arith.constant 8 : i32
    %268 = arith.muli %193, %c8_i32_113 : i32
    %c6_i32_114 = arith.constant 6 : i32
    %269 = arith.addi %268, %c6_i32_114 : i32
    %270 = arith.index_cast %269 : i32 to index
    %271 = memref.load %arg3[%270] : memref<64xi32, #tpu.memory_space<smem>>
    %272 = arith.index_cast %271 : i32 to index
    %c0_115 = arith.constant 0 : index
    %273 = vector.load %arg5[%272, %c0_115] : memref<64x128xf32, #tpu.memory_space<vmem>>, vector<1x128xf32>
    %274 = arith.index_cast %c2_i32_76 : i32 to index
    %c7_116 = arith.constant 7 : index
    %c0_117 = arith.constant 0 : index
    %275 = vector.load %arg7[%274, %c7_116, %c0_117] : memref<4x9x128xf32, #tpu.memory_space<vmem>>, vector<1x1x128xf32>
    %276 = vector.shape_cast %275 : vector<1x1x128xf32> to vector<1x128xf32>
    %277 = vector.shape_cast %273 : vector<1x128xf32> to vector<1x1x128xf32>
    tpu.vector_store %arg7[%274, %c7_116, %c0_117], %277 {strides = array<i32>} : memref<4x9x128xf32, #tpu.memory_space<vmem>>, vector<1x1x128xf32>,
    %c8_i32_118 = arith.constant 8 : i32
    %278 = arith.muli %193, %c8_i32_118 : i32
    %c7_i32_119 = arith.constant 7 : i32
    %279 = arith.addi %278, %c7_i32_119 : i32
    %280 = arith.index_cast %279 : i32 to index
    %281 = memref.load %arg3[%280] : memref<64xi32, #tpu.memory_space<smem>>
    %282 = arith.index_cast %281 : i32 to index
    %c0_120 = arith.constant 0 : index
    %283 = vector.load %arg5[%282, %c0_120] : memref<64x128xf32, #tpu.memory_space<vmem>>, vector<1x128xf32>
    %284 = arith.index_cast %c2_i32_76 : i32 to index
    %c8_121 = arith.constant 8 : index
    %c0_122 = arith.constant 0 : index
    %285 = vector.load %arg7[%284, %c8_121, %c0_122] : memref<4x9x128xf32, #tpu.memory_space<vmem>>, vector<1x1x128xf32>
    %286 = vector.shape_cast %285 : vector<1x1x128xf32> to vector<1x128xf32>
    %287 = vector.shape_cast %283 : vector<1x128xf32> to vector<1x1x128xf32>
    tpu.vector_store %arg7[%284, %c8_121, %c0_122], %287 {strides = array<i32>} : memref<4x9x128xf32, #tpu.memory_space<vmem>>, vector<1x1x128xf32>,
    %c3_i32_123 = arith.constant 3 : i32
    %c4_i32_124 = arith.constant 4 : i32
    %288 = arith.muli %arg0, %c4_i32_124 : i32
    %289 = arith.addi %288, %c3_i32_123 : i32
    %290 = arith.index_cast %289 : i32 to index
    %291 = memref.load %arg2[%290] : memref<8xi32, #tpu.memory_space<smem>>
    %292 = arith.index_cast %291 : i32 to index
    %c0_125 = arith.constant 0 : index
    %293 = vector.load %arg5[%292, %c0_125] : memref<64x128xf32, #tpu.memory_space<vmem>>, vector<1x128xf32>
    %294 = arith.index_cast %c3_i32_123 : i32 to index
    %c0_126 = arith.constant 0 : index
    %295 = vector.load %arg8[%294, %c0_126] : memref<4x128xf32, #tpu.memory_space<vmem>>, vector<1x128xf32>
    tpu.vector_store %arg8[%294, %c0_126], %293 {strides = array<i32>} : memref<4x128xf32, #tpu.memory_space<vmem>>, vector<1x128xf32>,
    %296 = arith.index_cast %289 : i32 to index
    %297 = memref.load %arg1[%296] : memref<8xi32, #tpu.memory_space<smem>>
    %298 = arith.index_cast %297 : i32 to index
    %c0_127 = arith.constant 0 : index
    %299 = vector.load %arg4[%298, %c0_127] : memref<64x128xf32, #tpu.memory_space<vmem>>, vector<1x128xf32>
    %300 = arith.index_cast %c3_i32_123 : i32 to index
    %c0_128 = arith.constant 0 : index
    %c0_129 = arith.constant 0 : index
    %301 = vector.load %arg7[%300, %c0_128, %c0_129] : memref<4x9x128xf32, #tpu.memory_space<vmem>>, vector<1x1x128xf32>
    %302 = vector.shape_cast %301 : vector<1x1x128xf32> to vector<1x128xf32>
    %303 = vector.shape_cast %299 : vector<1x128xf32> to vector<1x1x128xf32>
    tpu.vector_store %arg7[%300, %c0_128, %c0_129], %303 {strides = array<i32>} : memref<4x9x128xf32, #tpu.memory_space<vmem>>, vector<1x1x128xf32>,
    %c8_i32_130 = arith.constant 8 : i32
    %304 = arith.muli %289, %c8_i32_130 : i32
    %c0_i32_131 = arith.constant 0 : i32
    %305 = arith.addi %304, %c0_i32_131 : i32
    %306 = arith.index_cast %305 : i32 to index
    %307 = memref.load %arg3[%306] : memref<64xi32, #tpu.memory_space<smem>>
    %308 = arith.index_cast %307 : i32 to index
    %c0_132 = arith.constant 0 : index
    %309 = vector.load %arg5[%308, %c0_132] : memref<64x128xf32, #tpu.memory_space<vmem>>, vector<1x128xf32>
    %310 = arith.index_cast %c3_i32_123 : i32 to index
    %c1_133 = arith.constant 1 : index
    %c0_134 = arith.constant 0 : index
    %311 = vector.load %arg7[%310, %c1_133, %c0_134] : memref<4x9x128xf32, #tpu.memory_space<vmem>>, vector<1x1x128xf32>
    %312 = vector.shape_cast %311 : vector<1x1x128xf32> to vector<1x128xf32>
    %313 = vector.shape_cast %309 : vector<1x128xf32> to vector<1x1x128xf32>
    tpu.vector_store %arg7[%310, %c1_133, %c0_134], %313 {strides = array<i32>} : memref<4x9x128xf32, #tpu.memory_space<vmem>>, vector<1x1x128xf32>,
    %c8_i32_135 = arith.constant 8 : i32
    %314 = arith.muli %289, %c8_i32_135 : i32
    %c1_i32_136 = arith.constant 1 : i32
    %315 = arith.addi %314, %c1_i32_136 : i32
    %316 = arith.index_cast %315 : i32 to index
    %317 = memref.load %arg3[%316] : memref<64xi32, #tpu.memory_space<smem>>
    %318 = arith.index_cast %317 : i32 to index
    %c0_137 = arith.constant 0 : index
    %319 = vector.load %arg5[%318, %c0_137] : memref<64x128xf32, #tpu.memory_space<vmem>>, vector<1x128xf32>
    %320 = arith.index_cast %c3_i32_123 : i32 to index
    %c2_138 = arith.constant 2 : index
    %c0_139 = arith.constant 0 : index
    %321 = vector.load %arg7[%320, %c2_138, %c0_139] : memref<4x9x128xf32, #tpu.memory_space<vmem>>, vector<1x1x128xf32>
    %322 = vector.shape_cast %321 : vector<1x1x128xf32> to vector<1x128xf32>
    %323 = vector.shape_cast %319 : vector<1x128xf32> to vector<1x1x128xf32>
    tpu.vector_store %arg7[%320, %c2_138, %c0_139], %323 {strides = array<i32>} : memref<4x9x128xf32, #tpu.memory_space<vmem>>, vector<1x1x128xf32>,
    %c8_i32_140 = arith.constant 8 : i32
    %324 = arith.muli %289, %c8_i32_140 : i32
    %c2_i32_141 = arith.constant 2 : i32
    %325 = arith.addi %324, %c2_i32_141 : i32
    %326 = arith.index_cast %325 : i32 to index
    %327 = memref.load %arg3[%326] : memref<64xi32, #tpu.memory_space<smem>>
    %328 = arith.index_cast %327 : i32 to index
    %c0_142 = arith.constant 0 : index
    %329 = vector.load %arg5[%328, %c0_142] : memref<64x128xf32, #tpu.memory_space<vmem>>, vector<1x128xf32>
    %330 = arith.index_cast %c3_i32_123 : i32 to index
    %c3_143 = arith.constant 3 : index
    %c0_144 = arith.constant 0 : index
    %331 = vector.load %arg7[%330, %c3_143, %c0_144] : memref<4x9x128xf32, #tpu.memory_space<vmem>>, vector<1x1x128xf32>
    %332 = vector.shape_cast %331 : vector<1x1x128xf32> to vector<1x128xf32>
    %333 = vector.shape_cast %329 : vector<1x128xf32> to vector<1x1x128xf32>
    tpu.vector_store %arg7[%330, %c3_143, %c0_144], %333 {strides = array<i32>} : memref<4x9x128xf32, #tpu.memory_space<vmem>>, vector<1x1x128xf32>,
    %c8_i32_145 = arith.constant 8 : i32
    %334 = arith.muli %289, %c8_i32_145 : i32
    %c3_i32_146 = arith.constant 3 : i32
    %335 = arith.addi %334, %c3_i32_146 : i32
    %336 = arith.index_cast %335 : i32 to index
    %337 = memref.load %arg3[%336] : memref<64xi32, #tpu.memory_space<smem>>
    %338 = arith.index_cast %337 : i32 to index
    %c0_147 = arith.constant 0 : index
    %339 = vector.load %arg5[%338, %c0_147] : memref<64x128xf32, #tpu.memory_space<vmem>>, vector<1x128xf32>
    %340 = arith.index_cast %c3_i32_123 : i32 to index
    %c4_148 = arith.constant 4 : index
    %c0_149 = arith.constant 0 : index
    %341 = vector.load %arg7[%340, %c4_148, %c0_149] : memref<4x9x128xf32, #tpu.memory_space<vmem>>, vector<1x1x128xf32>
    %342 = vector.shape_cast %341 : vector<1x1x128xf32> to vector<1x128xf32>
    %343 = vector.shape_cast %339 : vector<1x128xf32> to vector<1x1x128xf32>
    tpu.vector_store %arg7[%340, %c4_148, %c0_149], %343 {strides = array<i32>} : memref<4x9x128xf32, #tpu.memory_space<vmem>>, vector<1x1x128xf32>,
    %c8_i32_150 = arith.constant 8 : i32
    %344 = arith.muli %289, %c8_i32_150 : i32
    %c4_i32_151 = arith.constant 4 : i32
    %345 = arith.addi %344, %c4_i32_151 : i32
    %346 = arith.index_cast %345 : i32 to index
    %347 = memref.load %arg3[%346] : memref<64xi32, #tpu.memory_space<smem>>
    %348 = arith.index_cast %347 : i32 to index
    %c0_152 = arith.constant 0 : index
    %349 = vector.load %arg5[%348, %c0_152] : memref<64x128xf32, #tpu.memory_space<vmem>>, vector<1x128xf32>
    %350 = arith.index_cast %c3_i32_123 : i32 to index
    %c5_153 = arith.constant 5 : index
    %c0_154 = arith.constant 0 : index
    %351 = vector.load %arg7[%350, %c5_153, %c0_154] : memref<4x9x128xf32, #tpu.memory_space<vmem>>, vector<1x1x128xf32>
    %352 = vector.shape_cast %351 : vector<1x1x128xf32> to vector<1x128xf32>
    %353 = vector.shape_cast %349 : vector<1x128xf32> to vector<1x1x128xf32>
    tpu.vector_store %arg7[%350, %c5_153, %c0_154], %353 {strides = array<i32>} : memref<4x9x128xf32, #tpu.memory_space<vmem>>, vector<1x1x128xf32>,
    %c8_i32_155 = arith.constant 8 : i32
    %354 = arith.muli %289, %c8_i32_155 : i32
    %c5_i32_156 = arith.constant 5 : i32
    %355 = arith.addi %354, %c5_i32_156 : i32
    %356 = arith.index_cast %355 : i32 to index
    %357 = memref.load %arg3[%356] : memref<64xi32, #tpu.memory_space<smem>>
    %358 = arith.index_cast %357 : i32 to index
    %c0_157 = arith.constant 0 : index
    %359 = vector.load %arg5[%358, %c0_157] : memref<64x128xf32, #tpu.memory_space<vmem>>, vector<1x128xf32>
    %360 = arith.index_cast %c3_i32_123 : i32 to index
    %c6_158 = arith.constant 6 : index
    %c0_159 = arith.constant 0 : index
    %361 = vector.load %arg7[%360, %c6_158, %c0_159] : memref<4x9x128xf32, #tpu.memory_space<vmem>>, vector<1x1x128xf32>
    %362 = vector.shape_cast %361 : vector<1x1x128xf32> to vector<1x128xf32>
    %363 = vector.shape_cast %359 : vector<1x128xf32> to vector<1x1x128xf32>
    tpu.vector_store %arg7[%360, %c6_158, %c0_159], %363 {strides = array<i32>} : memref<4x9x128xf32, #tpu.memory_space<vmem>>, vector<1x1x128xf32>,
    %c8_i32_160 = arith.constant 8 : i32
    %364 = arith.muli %289, %c8_i32_160 : i32
    %c6_i32_161 = arith.constant 6 : i32
    %365 = arith.addi %364, %c6_i32_161 : i32
    %366 = arith.index_cast %365 : i32 to index
    %367 = memref.load %arg3[%366] : memref<64xi32, #tpu.memory_space<smem>>
    %368 = arith.index_cast %367 : i32 to index
    %c0_162 = arith.constant 0 : index
    %369 = vector.load %arg5[%368, %c0_162] : memref<64x128xf32, #tpu.memory_space<vmem>>, vector<1x128xf32>
    %370 = arith.index_cast %c3_i32_123 : i32 to index
    %c7_163 = arith.constant 7 : index
    %c0_164 = arith.constant 0 : index
    %371 = vector.load %arg7[%370, %c7_163, %c0_164] : memref<4x9x128xf32, #tpu.memory_space<vmem>>, vector<1x1x128xf32>
    %372 = vector.shape_cast %371 : vector<1x1x128xf32> to vector<1x128xf32>
    %373 = vector.shape_cast %369 : vector<1x128xf32> to vector<1x1x128xf32>
    tpu.vector_store %arg7[%370, %c7_163, %c0_164], %373 {strides = array<i32>} : memref<4x9x128xf32, #tpu.memory_space<vmem>>, vector<1x1x128xf32>,
    %c8_i32_165 = arith.constant 8 : i32
    %374 = arith.muli %289, %c8_i32_165 : i32
    %c7_i32_166 = arith.constant 7 : i32
    %375 = arith.addi %374, %c7_i32_166 : i32
    %376 = arith.index_cast %375 : i32 to index
    %377 = memref.load %arg3[%376] : memref<64xi32, #tpu.memory_space<smem>>
    %378 = arith.index_cast %377 : i32 to index
    %c0_167 = arith.constant 0 : index
    %379 = vector.load %arg5[%378, %c0_167] : memref<64x128xf32, #tpu.memory_space<vmem>>, vector<1x128xf32>
    %380 = arith.index_cast %c3_i32_123 : i32 to index
    %c8_168 = arith.constant 8 : index
    %c0_169 = arith.constant 0 : index
    %381 = vector.load %arg7[%380, %c8_168, %c0_169] : memref<4x9x128xf32, #tpu.memory_space<vmem>>, vector<1x1x128xf32>
    %382 = vector.shape_cast %381 : vector<1x1x128xf32> to vector<1x128xf32>
    %383 = vector.shape_cast %379 : vector<1x128xf32> to vector<1x1x128xf32>
    tpu.vector_store %arg7[%380, %c8_168, %c0_169], %383 {strides = array<i32>} : memref<4x9x128xf32, #tpu.memory_space<vmem>>, vector<1x1x128xf32>,
    %c4_i32_170 = arith.constant 4 : i32
    %c0_171 = arith.constant 0 : index
    %c0_172 = arith.constant 0 : index
    %c0_173 = arith.constant 0 : index
    %384 = vector.load %arg7[%c0_171, %c0_172, %c0_173] : memref<4x9x128xf32, #tpu.memory_space<vmem>>, vector<4x9x128xf32>
    %c0_174 = arith.constant 0 : index
    %c0_175 = arith.constant 0 : index
    %385 = vector.load %arg8[%c0_174, %c0_175] : memref<4x128xf32, #tpu.memory_space<vmem>>, vector<4x128xf32>
    %386 = vector.shape_cast %385 : vector<4x128xf32> to vector<4x1x128xf32>
    %387 = vector.broadcast %386 : vector<4x1x128xf32> to vector<4x9x128xf32>
    %388 = arith.mulf %384, %387 : vector<4x9x128xf32>
    %cst = arith.constant dense<0.000000e+00> : vector<4x9xf32>
    %389 = vector.multi_reduction <add>, %388, %cst [2] : vector<4x9x128xf32> to vector<4x9xf32>
    %390 = tpu.iota {dimensions = array<i32: 1>} : vector<4x9xi32>
    %c0_i32_176 = arith.constant 0 : i32
    %391 = vector.broadcast %c0_i32_176 : i32 to vector<4x9xi32>
    %392 = arith.cmpi eq, %390, %391 : vector<4x9xi32>
    %cst_177 = arith.constant 0.000000e+00 : f32
    %393 = vector.broadcast %cst_177 : f32 to vector<4x9xf32>
    %394 = arith.subf %393, %389 : vector<4x9xf32>
    %395 = arith.select %392, %389, %394 : vector<4x9xi1>, vector<4x9xf32>
    %cst_178 = arith.constant 0.000000e+00 : f32
    %396 = vector.broadcast %cst_178 : f32 to vector<4x9xf32>
    %397 = arith.minimumf %395, %396 : vector<4x9xf32>
    %398 = math.absf %395 : vector<4x9xf32>
    %cst_179 = arith.constant 0.000000e+00 : f32
    %399 = vector.broadcast %cst_179 : f32 to vector<4x9xf32>
    %400 = arith.subf %399, %398 : vector<4x9xf32>
    %401 = math.exp %400 : vector<4x9xf32>
    %402 = math.log1p %401 : vector<4x9xf32>
    %403 = arith.subf %397, %402 : vector<4x9xf32>
    %404 = vector.shape_cast %403 : vector<4x9xf32> to vector<1x4x9xf32>
    %cst_180 = arith.constant dense<0.000000e+00> : vector<1xf32>
    %405 = vector.multi_reduction <add>, %404, %cst_180 [1, 2] : vector<1x4x9xf32> to vector<1xf32>
    %406 = vector.shape_cast %405 : vector<1xf32> to vector<1x1x1xf32>
    %407 = vector.extract %406[0, 0, 0] : f32 from vector<1x1x1xf32>
    %408 = vector.broadcast %407 : f32 to vector<1x8x128xf32>
    %c0_181 = arith.constant 0 : index
    %c0_182 = arith.constant 0 : index
    %c0_183 = arith.constant 0 : index
    %409 = vector.load %arg6[%c0_181, %c0_182, %c0_183] : memref<1x8x128xf32, #tpu.memory_space<vmem>>, vector<1x8x128xf32>
    tpu.vector_store %arg6[%c0_181, %c0_182, %c0_183], %408 {strides = array<i32>} : memref<1x8x128xf32, #tpu.memory_space<vmem>>, vector<1x8x128xf32>,
    return
  }
  func.func @transform_0(%arg0: i32, %arg1: memref<8xi32, #tpu.memory_space<smem>>, %arg2: memref<8xi32, #tpu.memory_space<smem>>, %arg3: memref<64xi32, #tpu.memory_space<smem>>) -> (i32, i32) {
    %c0_i32 = arith.constant 0 : i32
    %c0_i32_0 = arith.constant 0 : i32
    %c0_i32_1 = arith.constant 0 : i32
    return %c0_i32, %c0_i32_0 : i32, i32
  }
  func.func @transform_1(%arg0: i32, %arg1: memref<8xi32, #tpu.memory_space<smem>>, %arg2: memref<8xi32, #tpu.memory_space<smem>>, %arg3: memref<64xi32, #tpu.memory_space<smem>>) -> (i32, i32) {
    %c0_i32 = arith.constant 0 : i32
    %c0_i32_0 = arith.constant 0 : i32
    %c0_i32_1 = arith.constant 0 : i32
    return %c0_i32, %c0_i32_0 : i32, i32
  }
  func.func @transform_2(%arg0: i32, %arg1: memref<8xi32, #tpu.memory_space<smem>>, %arg2: memref<8xi32, #tpu.memory_space<smem>>, %arg3: memref<64xi32, #tpu.memory_space<smem>>) -> (i32, i32, i32) {
    %c0_i32 = arith.constant 0 : i32
    %c0_i32_0 = arith.constant 0 : i32
    %c0_i32_1 = arith.constant 0 : i32
    return %arg0, %c0_i32, %c0_i32_0 : i32, i32, i32
  }
}

</mosaic_0001>

<bundles_post_ra>
// kernel: tpu_custom_call.1
= control target key start
LH: loop header
LB: loop body
LE: loop exit
PB: predicated region body
PF: predicated region fallthrough
CT: control target
= control target key end

     0   :  { %s1324_s0 = inlined_call_operand.hbm [shape: s32[8], index: 0, kind: input, shape index: {}]   ;;  %s1325_s3 = inlined_call_operand.hbm [shape: f32[64,128], index: 3, kind: input, shape index: {}]   ;;  %s1326_s4 = inlined_call_operand.hbm [shape: f32[64,128], index: 4, kind: input, shape index: {}]   ;;  %s1327_s5 = inlined_call_operand.hbm [shape: f32[2,8,128], index: 5, kind: output, shape index: {}]   ;;  %s1328_s1 = inlined_call_operand.vmem [shape: s32[8], index: 1, kind: input, shape index: {}]   ;;  %s1329_s2 = inlined_call_operand.vmem [shape: s32[64], index: 2, kind: input, shape index: {}]  }
   0x1   :  { %s812_s20 = scalar_lea.hbm %s1324_s0, 16 }
   0x2   :  { %p813_p0 = scmp.ne.s32.totalorder %s1324_s0, %s812_s20  ;;  %p816_p1 = scmp.lt.u32.totalorder %s812_s20, %s1324_s0 }
   0x4   :  { %p818_p2 = pnand %p816_p1, %p813_p0 }
   0x6   :  { %821 = shalt.err (!%p818_p2)  }
   0x7   :  { %s976_s25 = smov [#allocation5]   ;;  %s12_s30 = sshll.u32 %s1328_s1, 4  ;;  %s13_s30 = int_to_ptr.vmem [resolvable:$true] %s12_s30 }
   0x8   :  { %11 = dma.hbm_to_smem %s1324_s0, 16, %s976_s25, [#allocation4] }
   0x9   :  { %s16_s8 = sshll.u32 %s1329_s2, 4  ;;  %s822_s9 = scalar_lea.vmem %s13_s30, 16  ;;  %s17_s8 = int_to_ptr.vmem [resolvable:$true] %s16_s8 }
   0xa   :  { %p823_p3 = scmp.ne.s32.totalorder %s13_s30, %s822_s9  ;;  %p827_p4 = scmp.lt.s32.totalorder %s13_s30, %s13_s30 }
   0xb   :  { %p828_p5 = scmp.lt.s32.totalorder %s822_s9, %s822_s9 }
   0xd   :  { %p829_p6 = por %p828_p5, %p827_p4 }
   0xf   :  { %p830_p7 = pnand %p829_p6, %p823_p3 }
  0x11   :  { %833 = shalt.err (!%p830_p7)  }
  0x12   :  { %s977_s10 = smov [#allocation6]   ;;  %s834_s0 = scalar_lea.vmem %s17_s8, 16 }
  0x13   :  { %15 = dma.vmem_to_smem %s13_s30, 16, %s977_s10, [#allocation4] }
  0x14   :  { %p835_p8 = scmp.ne.s32.totalorder %s17_s8, %s834_s0  ;;  %p839_p9 = scmp.lt.s32.totalorder %s17_s8, %s17_s8 }
  0x15   :  { %p840_p10 = scmp.lt.s32.totalorder %s834_s0, %s834_s0 }
  0x17   :  { %p841_p11 = por %p840_p10, %p839_p9 }
  0x19   :  { %p842_p12 = pnand %p841_p11, %p835_p8 }
  0x1b   :  { %845 = shalt.err (!%p842_p12)  }
  0x1c   :  { %s978_s1 = smov [#allocation7]  }
  0x1d   :  { %19 = dma.vmem_to_smem %s17_s8, 16, %s978_s1, [#allocation4] }
  0x1e   :  { %946 = dma.done.wait [#allocation4], 48 }
  0x1f   :  { %947 = vsyncadd [#allocation4], 4294967248 }
  0x20   :  { %21 = sfence }
  0x21   :  { %22 = vsyncpa [#allocation9], 0 }
  0x22   :  { %23 = vsyncpa [#allocation12], 0 }
  0x23   :  { %24 = vsyncpa [#allocation10], 0 }
  0x24   :  { %26 = vsyncpa [#allocation10 + $0x1], 0  ;;  %s1033_s2 = smov 0   ;;  %s1035_s11 = smov 0  }
  0x25   :  { %s1037_s12 = smov 0   ;;  %s1039_s13 = smov 0  }
  0x26 LB: > { %s1054_s14 = sadd.s32 4294967295, %s974_s13   ;;  %s713_s15 = sadd.s32 4294967294, %s974_s13   ;;  %s974_s13 = sphi %s1039_s13, %s1351_s13   ;;  %s970_s12 = sphi %s1037_s12, %s1350_s12   ;;  %s966_s11 = sphi %s1035_s11, %s1349_s11   ;;  %s962_s2 = sphi %s1033_s2, %s1348_s2  }
  0x27   : > { %s1058_s16 = sadd.s32 1, %s974_s13   ;;  %s81_s17 = sadd.s32 1, %s970_s12 }
  0x28   : > { %s78_s18 = ssub.s32 %s974_s13, %s1058_s16  ;;  %p91_p13 = scmp.ne.s32.totalorder %s970_s12, %s966_s11 }
  0x29   : > { %p79_p0 = scmp.eq.s32.totalorder %s78_s18, 0  ;;  %p92_p1 = scmp.eq.s32.totalorder %s1054_s14, 1 }
  0x2a   : > { %p97_p2 = scmp.ne.s32.totalorder %s966_s11, %s962_s2  ;;  %p98_p3 = scmp.eq.s32.totalorder %s713_s15, 1 }
  0x2b   : > { %s1069_s19 = scalar_select %p79_p0, %s970_s12, %s81_s17  }
  0x2c   : > { %p1071_p4 = por %p92_p1, %p91_p13  ;;  %p1075_p5 = por %p98_p3, %p97_p2 }
  0x2d   : > { %p714_p6 = scmp.ge.s32.totalorder %s974_s13, 1  ;;  %p105_p7 = scmp.lt.s32.totalorder %s974_s13, 3 }
  0x2e   : > { %s1335_s20 = scalar_select %p1071_p4, 1, 0 }
  0x2f   : > { %s1336_s21 = scalar_select %p1075_p5, 1, 0 }
  0x30   : > { %p1330_p8 = scmp.eq.s32.totalorder %s1054_s14, 0  ;;  %p1082_p9 = pnand %p714_p6, %p105_p7 }
  0x31   : > { %s979_s23 = smov [#allocation8]   ;;  %s980_s26 = smov [#allocation11]  }
  0x32   : > { %s1337_s22 = scalar_select %p1082_p9, 1, 0 }
  0x33   : > { %s117_s24 = sshll.u32 %s979_s23, 4  ;;  %p752_p10 = pneg %p1082_p9  ;;  %s118_s24 = int_to_ptr.vmem [resolvable:$true] %s117_s24 }
  0x34   : > { %s130_s27 = sshll.u32 %s980_s26, 4  ;;  %s846_s30 = scalar_lea.hbm %s1325_s3, 1024  ;;  %s1094_s27 = int_to_ptr.vmem [resolvable:$true] %s130_s27 }
  0x35   : > { %p1090_p11 = pnand %p1330_p8, %p752_p10  ;;  %p847_p12 = scmp.ne.s32.totalorder %s1325_s3, %s846_s30 }
  0x36   : > { %p853_p2 = scmp.lt.u32.totalorder %s846_s30, %s1325_s3 }
  0x37   : > { %p848_p13 = pneg %p1090_p11 }
  0x39   : > { %p849_p0 = pnand %p848_p13, %p847_p12 }
  0x3b   : > { %p850_p1 = pneg %p849_p0 }
  0x3d   : > { %p855_p3 = pnand %p853_p2, %p850_p1 }
  0x3f   : > { %858 = shalt.err (!%p855_p3)
}
  0x40   : > { %s859_s10 = scalar_lea.vmem %s118_s24, 1024  ;;  %p867_p8 = scmp.lt.s32.totalorder %s118_s24, %s118_s24 }
  0x41   : > { %p860_p6 = scmp.ne.s32.totalorder %s118_s24, %s859_s10  ;;  %p868_p5 = scmp.lt.s32.totalorder %s859_s10, %s859_s10 }
  0x43   : > { %p862_p7 = pnand %p860_p6, %p848_p13  ;;  %p869_p4 = por %p868_p5, %p867_p8 }
  0x45   : > { %p863_p10 = pneg %p862_p7 }
  0x47   : > { %p870_p9 = pnand %p869_p4, %p863_p10 }
  0x49   : > { %873 = shalt.err (!%p870_p9)
}
  0x4a   : > { %s981_s0 = smov 128   ;;  %s982_s1 = smov 8  }
  0x4b   : > { %755 = dma.hbm_to_vmem [thread:$0]  (!%p1090_p11), %s1325_s3, 1024, %s118_s24, [#allocation9], %s981_s0, %s981_s0, %s982_s1  }
  0x4c   : > { %s874_s26 = scalar_lea.hbm %s1326_s4, 1024 }
  0x4d   : > { %p875_p12 = scmp.ne.s32.totalorder %s1326_s4, %s874_s26  ;;  %p881_p8 = scmp.lt.u32.totalorder %s874_s26, %s1326_s4 }
  0x4f   : > { %p877_p4 = pnand %p875_p12, %p848_p13 }
  0x51   : > { %p878_p5 = pneg %p877_p4 }
  0x53   : > { %p883_p9 = pnand %p881_p8, %p878_p5 }
  0x55   : > { %886 = shalt.err (!%p883_p9)
}
  0x56   : > { %s887_s24 = scalar_lea.vmem %s1094_s27, 1024  ;;  %p895_p3 = scmp.lt.s32.totalorder %s1094_s27, %s1094_s27 }
  0x57   : > { %p888_p0 = scmp.ne.s32.totalorder %s1094_s27, %s887_s24  ;;  %p896_p6 = scmp.lt.s32.totalorder %s887_s24, %s887_s24 }
  0x59   : > { %p890_p1 = pnand %p888_p0, %p848_p13  ;;  %p897_p7 = por %p896_p6, %p895_p3 }
  0x5b   : > { %p891_p2 = pneg %p890_p1 }
  0x5d   : > { %p898_p10 = pnand %p897_p7, %p891_p2 }
  0x5f   : > { %901 = shalt.err (!%p898_p10)
}
  0x60   : > { %758 = dma.hbm_to_vmem [thread:$0]  (!%p1090_p11), %s1326_s4, 1024, %s1094_s27, [#allocation12], %s981_s0, %s981_s0, %s982_s1  }
  0x61   : > { %p1339_p12 = scmp.ne.s32.totalorder %s1337_s22, 0 }
  0x62   : > { %p1340_p4 = scmp.eq.s32.totalorder (!%p1339_p12), %s1054_s14, 0 }
  0x63   : > { %146 = sbr.rel (%p1339_p12) target bundleno = 591 (0x24f), region = 28 }
  0x6a   : > { %949 = dma.done.wait (%p1340_p4), [#allocation9], 1024   ;;  %p1341_p13 = pmov %p1340_p4 }
  0x6b   : > { %p1342_p5 = pmov %p1340_p4 }
  0x6c   : > { %951 = vsyncadd (%p1341_p13), [#allocation9], 4294966272 }
  0x6d   : > { %953 = dma.done.wait (%p1342_p5), [#allocation12], 1024   ;;  %p1343_p8 = pmov %p1340_p4 }
  0x6e   : > { %s1154_s25 = sshll.u32 %s1054_s14, 2  ;;  %s1157_s22 = sshll.u32 %s1054_s14, 5  ;;  %v387_v0 = vlaneseq  ;;  %v983_v14 = vmov 1966171168   ;;  %vm430_vm0 = vcmask 1040384   ;;  %vm477_vm1 = vcmask 130112  }
  0x6f   : > { %955 = vsyncadd (%p1343_p8), [#allocation12], 4294966272  ;;  %s168_s27 = sld [smem:[#allocation6 + %s1154_s25]]  ;;  %s181_s0 = sadd.s32 1, %s1157_s22  ;;  %v385_v15 = vunpack.c.l.s4 %v983_v14  ;;  %vm506_vm2 = vcmask 1041409   ;;  %vm508_vm3 = vcmask 1042434  }
  0x70   : > { %s172_s9 = sld [smem:[#allocation5 + %s1154_s25]]  ;;  %v1163_v1 = vshrl.u32 %v387_v0, 7  ;;  %v1165_v2 = vand.u32 127, %v387_v0  ;;  %s186_s15 = sadd.s32 2, %s1157_s22  ;;  %vm510_vm4 = vcmask 1043459   ;;  %vm577_vm7 = vcmask 68608  }
  0x71   : > { %s177_s10 = sld [smem:[#allocation7 + %s1157_s22]]  ;;  %s191_s18 = sadd.s32 3, %s1157_s22  ;;  %v386_v19 = vunpack.c.0.s8 %v385_v15 }
  0x72   : > { %s182_s1 = sld [smem:[#allocation7 + %s181_s0]]  ;;  %v1171_v3 = vsub.s32 %v1165_v2, %v1163_v1  ;;  %s196_s26 = sadd.s32 4, %s1157_s22  ;;  %v1197_v24 = vsub.s32 0, %v1163_v1  ;;  %vm451_vm5 = vcmp.eq.s32.totalorder %v1165_v2, 0 }
  0x73   : > { %s187_s17 = sld [smem:[#allocation7 + %s186_s15]]  ;;  %s201_s29 = sadd.s32 5, %s1157_s22  ;;  %v389_v22 = vsub.s32 %v386_v19, %v1163_v1 }
  0x74   : > { %s192_s23 = sld [smem:[#allocation7 + %s191_s18]]  ;;  %s206_s8 = sadd.s32 6, %s1157_s22 }
  0x75   : > { %s197_s28 = sld [smem:[#allocation7 + %s196_s26]]  ;;  %s169_s30 = scalar_lea.vmem [#allocation11], %s168_s27 }
  0x76   : > { %v170_v4 = vld [vmem:[%s169_s30] sm:$0x1]  ;;  %s173_s6 = scalar_lea.vmem [#allocation8], %s172_s9  ;;  %s202_s24 = sld [smem:[#allocation7 + %s201_s29]] }
  0x77   : > { %v174_v5 = vld [vmem:[%s173_s6] sm:$0x1]  ;;  %171 = vst [vmem:[#allocation3] sm:$0x1] %v170_v4  ;;  %s178_s7 = scalar_lea.vmem [#allocation11], %s177_s10  ;;  %s207_s15 = sld [smem:[#allocation7 + %s206_s8]] }
  0x78   : > { %175 = vst [vmem:[#allocation2] sm:$0x1] %v174_v5  ;;  %v179_v6 = vld [vmem:[%s178_s7] sm:$0x1]  ;;  %s183_s0 = scalar_lea.vmem [#allocation11], %s182_s1  ;;  %s216_s27 = sadd.s32 1, %s1154_s25 }
  0x79   : > { %180 = vst [vmem:[#allocation2 + $0x1] sm:$0x1] %v179_v6  ;;  %v184_v7 = vld [vmem:[%s183_s0] sm:$0x1]  ;;  %s188_s18 = scalar_lea.vmem [#allocation11], %s187_s17  ;;  %s217_s26 = sld [smem:[#allocation6 + %s216_s27]] }
  0x7a   : > { %185 = vst [vmem:[#allocation2 + $0x2] sm:$0x1] %v184_v7  ;;  %v189_v8 = vld [vmem:[%s188_s18] sm:$0x1]  ;;  %s193_s9 = scalar_lea.vmem [#allocation11], %s192_s23  ;;  %s1334_s29 = sadd.s32 2, %s1154_s25 }
  0x7b   : > { %190 = vst [vmem:[#allocation2 + $0x3] sm:$0x1] %v189_v8  ;;  %v194_v9 = vld [vmem:[%s193_s9] sm:$0x1]  ;;  %s198_s10 = scalar_lea.vmem [#allocation11], %s197_s28  ;;  %s1333_s30 = sadd.s32 3, %s1154_s25 }
  0x7c   : > { %195 = vst [vmem:[#allocation2 + $0x4] sm:$0x1] %v194_v9  ;;  %v199_v10 = vld [vmem:[%s198_s10] sm:$0x1]  ;;  %s267_s1 = sld [smem:[#allocation6 + %s1334_s29]]  ;;  %s203_s6 = scalar_lea.vmem [#allocation11], %s202_s24 }
  0x7d   : > { %200 = vst [vmem:[#allocation2 + $0x5] sm:$0x1] %v199_v10  ;;  %v204_v11 = vld [vmem:[%s203_s6] sm:$0x1]  ;;  %s317_s17 = sld [smem:[#allocation6 + %s1333_s30]]  ;;  %s1184_s8 = sadd.s32 8, %s1157_s22 }
  0x7e   : > { %s221_s7 = sld [smem:[#allocation5 + %s216_s27]]  ;;  %205 = vst [vmem:[#allocation2 + $0x6] sm:$0x1] %v204_v11  ;;  %s208_s23 = scalar_lea.vmem [#allocation11], %s207_s15  ;;  %v472_v10 = vadd.s32 4294967288, %v1165_v2 }
  0x7f   : > { %v209_v12 = vld [vmem:[%s208_s23] sm:$0x1]  ;;  %s227_s28 = sld [smem:[#allocation7 + %s1184_s8]]  ;;  %s231_s0 = sadd.s32 1, %s1184_s8 }
  0x80   : > { %210 = vst [vmem:[#allocation2 + $0x7] sm:$0x1] %v209_v12  ;;  %s232_s18 = sld [smem:[#allocation7 + %s231_s0]]  ;;  %s218_s9 = scalar_lea.vmem [#allocation11], %s217_s26  ;;  %v475_v15 = vsub.s32 %v472_v10, %v1163_v1 }
  0x81   : > { %v219_v13 = vld [vmem:[%s218_s9] sm:$0x1]  ;;  %s236_s24 = sadd.s32 2, %s1184_s8  ;;  %s241_s27 = sadd.s32 3, %s1184_s8 }
  0x82   : > { %220 = vst [vmem:[#allocation3 + $0x1] sm:$0x1] %v219_v13  ;;  %s237_s10 = sld [smem:[#allocation7 + %s236_s24]]  ;;  %s268_s6 = scalar_lea.vmem [#allocation11], %s267_s1 }
  0x83   : > { %v269_v16 = vld [vmem:[%s268_s6] sm:$0x1]  ;;  %s318_s30 = scalar_lea.vmem [#allocation11], %s317_s17  ;;  %s242_s23 = sld [smem:[#allocation7 + %s241_s27]] }
  0x84   : > { %270 = vst [vmem:[#allocation3 + $0x2] sm:$0x1] %v269_v16  ;;  %v319_v17 = vld [vmem:[%s318_s30] sm:$0x1]  ;;  %s222_s15 = scalar_lea.vmem [#allocation8], %s221_s7  ;;  %s246_s0 = sadd.s32 4, %s1184_s8 }
  0x85   : > { %v223_v18 = vld [vmem:[%s222_s15] sm:$0x1]  ;;  %320 = vst [vmem:[#allocation3 + $0x3] sm:$0x1] %v319_v17  ;;  %s247_s26 = sld [smem:[#allocation7 + %s246_s0]]  ;;  %s228_s9 = scalar_lea.vmem [#allocation11], %s227_s28 }
  0x86   : > { %225 = vst [vmem:[#allocation2 + $0x10] sm:$0x1] %v223_v18  ;;  %v229_v20 = vld [vmem:[%s228_s9] sm:$0x1]  ;;  %s251_s24 = sadd.s32 5, %s1184_s8  ;;  %s233_s1 = scalar_lea.vmem [#allocation11], %s232_s18 }
  0x87   : > { %230 = vst [vmem:[#allocation2 + $0x11] sm:$0x1] %v229_v20  ;;  %v234_v21 = vld [vmem:[%s233_s1] sm:$0x1]  ;;  %s252_s6 = sld [smem:[#allocation7 + %s251_s24]]  ;;  %s256_s17 = sadd.s32 6, %s1184_s8 }
  0x88   : > { %235 = vst [vmem:[#allocation2 + $0x12] sm:$0x1] %v234_v21  ;;  %s257_s30 = sld [smem:[#allocation7 + %s256_s17]]  ;;  %s238_s7 = scalar_lea.vmem [#allocation11], %s237_s10  ;;  %v366_v30 = vld [vmem:[#allocation2] sm:$0xff] }
  0x89   : > { %v239_v23 = vld [vmem:[%s238_s7] sm:$0x1]  ;;  %s211_s27 = sadd.s32 7, %s1157_s22  ;;  %s261_s15 = sadd.s32 7, %s1184_s8 }
  0x8a   : > { %240 = vst [vmem:[#allocation2 + $0x13] sm:$0x1] %v239_v23  ;;  %s212_s29 = sld [smem:[#allocation7 + %s211_s27]]  ;;  %s243_s28 = scalar_lea.vmem [#allocation11], %s242_s23 }
  0x8b   : > { %v244_v25 = vld [vmem:[%s243_s28] sm:$0x1]  ;;  %s262_s18 = sld [smem:[#allocation7 + %s261_s15]]  ;;  %s248_s0 = scalar_lea.vmem [#allocation11], %s247_s26 }
  0x8c   : > { %v726_v26 = vld.sshfl [vmem:[#allocation3] sm:$0x33 pattern:$0x75316420]  ;;  %245 = vst [vmem:[#allocation2 + $0x14] sm:$0x1] %v244_v25 }
  0x8d   : > { %v249_v27 = vld [vmem:[%s248_s0] sm:$0x1]  ;;  %v1199_v28 = vrot.slane %v726_v26, %v389_v22  ;;  %v383_v29 = vcombine.high %v726_v26, %v726_v26  ;;  %s1344_s10 = sadd.s32 2, %s1154_s25  ;;  %s253_s8 = scalar_lea.vmem [#allocation11], %s252_s6 }
  0x8e   : > { %250 = vst [vmem:[#allocation2 + $0x15] sm:$0x1] %v249_v27  ;;  %s271_s9 = sld [smem:[#allocation5 + %s1344_s10]]  ;;  %v254_v31 = vld [vmem:[%s253_s8] sm:$0x1]  ;;  %s1204_s24 = sadd.s32 16, %s1157_s22 }
  0x8f   : > { %v403_v32 = vrot.slane %v1199_v28, %v1197_v24  ;;  %255 = vst [vmem:[#allocation2 + $0x16] sm:$0x1] %v254_v31  ;;  %s258_s23 = scalar_lea.vmem [#allocation11], %s257_s30  ;;  %s277_s26 = sld [smem:[#allocation7 + %s1204_s24]]  ;;  %v1210_v34 = vrot.slane %v383_v29, %v389_v22  ;;  %v398_v55 = vcombine.high %v1199_v28, %v1199_v28 }
  0x90   : > { %v259_v33 = vld [vmem:[%s258_s23] sm:$0x1]  ;;  %s281_s1 = sadd.s32 1, %s1204_s24  ;;  %s213_s6 = scalar_lea.vmem [#allocation11], %s212_s29 }
  0x91   : > { %260 = vst [vmem:[#allocation2 + $0x17] sm:$0x1] %v259_v33  ;;  %s282_s17 = sld [smem:[#allocation7 + %s281_s1]]  ;;  %v420_v35 = vmul.f32 %v403_v32, %v366_v30  ;;  %v214_v36 = vld [vmem:[%s213_s6] sm:$0x1]  ;;  %s286_s7 = sadd.s32 2, %s1204_s24  ;;  %v407_v38 = vrot.slane %v1210_v34, %v1197_v24  ;;  %v399_v59 = vcombine.high %v1210_v34, %v1210_v34  ;;  %v411_v60 = vrot.slane %v398_v55, %v1197_v24 }
  0x92   : > { %215 = vst [vmem:[#allocation2 + $0x8] sm:$0x1] %v214_v36  ;;  %s263_s27 = scalar_lea.vmem [#allocation11], %s262_s18  ;;  %s287_s15 = sld [smem:[#allocation7 + %s286_s7]] }
  0x93   : > { %v264_v37 = vld [vmem:[%s263_s27] sm:$0x1]  ;;  %s291_s28 = sadd.s32 3, %s1204_s24  ;;  %428 = vadd.xlane.f32.xlu0 %v420_v35  ;;  %s296_s10 = sadd.s32 4, %s1204_s24  ;;  %v415_v6 = vrot.slane %v399_v59, %v1197_v24 }
  0x94   : > { %265 = vst [vmem:[#allocation2 + $0x18] sm:$0x1] %v264_v37  ;;  %s1214_s30 = sld [smem:[#allocation7 + %s291_s28]]  ;;  %s272_s0 = scalar_lea.vmem [#allocation8], %s271_s9 }
  0x95   : > { %v273_v39 = vld [vmem:[%s272_s0] sm:$0x1]  ;;  %s301_s29 = sadd.s32 5, %s1204_s24  ;;  %s1220_s8 = sld [smem:[#allocation7 + %s296_s10]] }
  0x96   : > { %275 = vst [vmem:[#allocation2 + $0x20] sm:$0x1] %v273_v39  ;;  %s278_s18 = scalar_lea.vmem [#allocation11], %s277_s26  ;;  %s1222_s23 = sld [smem:[#allocation7 + %s301_s29]] }
  0x97   : > { %v279_v40 = vld [vmem:[%s278_s18] sm:$0x1]  ;;  %s283_s1 = scalar_lea.vmem [#allocation11], %s282_s17  ;;  %s306_s6 = sadd.s32 6, %s1204_s24 }
  0x98   : > { %v368_v41 = vld [vmem:[#allocation2 + $0x10] sm:$0xff]  ;;  %280 = vst [vmem:[#allocation2 + $0x21] sm:$0x1] %v279_v40  ;;  %v284_v42 = vld [vmem:[%s283_s1] sm:$0x1]  ;;  %s311_s7 = sadd.s32 7, %s1204_s24 }
  0x99   : > { %v422_v43 = vmul.f32 %v407_v38, %v368_v41  ;;  %285 = vst [vmem:[#allocation2 + $0x22] sm:$0x1] %v284_v42  ;;  %s1226_s9 = sld [smem:[#allocation7 + %s306_s6]]  ;;  %v367_v44 = vld [vmem:[#allocation2 + $0x8] sm:$0x1]  ;;  %s288_s26 = scalar_lea.vmem [#allocation11], %s287_s15 }
  0x9a   : > { %v289_v45 = vld [vmem:[%s288_s26] sm:$0x1]  ;;  %s1228_s27 = sld [smem:[#allocation7 + %s311_s7]]  ;;  %v421_v46 = vmul.f32 %v403_v32, %v367_v44  ;;  %s293_s17 = scalar_lea.vmem [#allocation11], %s1214_s30 }
  0x9b   : > { %434 = vadd.xlane.f32.xlu1 %v422_v43  ;;  %v369_v47 = vld [vmem:[#allocation2 + $0x18] sm:$0x1]  ;;  %290 = vst [vmem:[#allocation2 + $0x23] sm:$0x1] %v289_v45  ;;  %v294_v48 = vld [vmem:[%s293_s17] sm:$0x1] }
  0x9c   : > { %s1232_s24 = sadd.s32 24, %s1157_s22  ;;  %s1345_s28 = sadd.s32 3, %s1154_s25  ;;  %v423_v49 = vmul.f32 %v407_v38, %v369_v47  ;;  %295 = vst [vmem:[#allocation2 + $0x24] sm:$0x1] %v294_v48  ;;  %v431_v50 = vsel %vm430_vm0, %v421_v46, 0.0 }
  0x9d   : > { %s321_s0 = sld [smem:[#allocation5 + %s1345_s28]]  ;;  %s361_s15 = sadd.s32 7, %s1232_s24  ;;  %432 = vadd.xlane.f32.xlu0 %v431_v50 }
  0x9e   : > { %s298_s10 = scalar_lea.vmem [#allocation11], %s1220_s8  ;;  %s362_s29 = sld [smem:[#allocation7 + %s361_s15]]  ;;  %v436_v52 = vsel %vm430_vm0, %v423_v49, 0.0 }
  0x9f   : > { %v299_v51 = vld [vmem:[%s298_s10] sm:$0x1]  ;;  %s303_s25 = scalar_lea.vmem [#allocation11], %s1222_s23  ;;  %s327_s22 = sld [smem:[#allocation7 + %s1232_s24]]  ;;  %437 = vadd.xlane.f32.xlu1 %v436_v52 }
  0xa0   : > { %300 = vst [vmem:[#allocation2 + $0x25] sm:$0x1] %v299_v51  ;;  %v304_v53 = vld [vmem:[%s303_s25] sm:$0x1]  ;;  %s331_s30 = sadd.s32 1, %s1232_s24  ;;  %s308_s1 = scalar_lea.vmem [#allocation11], %s1226_s9 }
  0xa1   : > { %305 = vst [vmem:[#allocation2 + $0x26] sm:$0x1] %v304_v53  ;;  %s332_s18 = sld [smem:[#allocation7 + %s331_s30]]  ;;  %v309_v54 = vld [vmem:[%s308_s1] sm:$0x1]  ;;  %s336_s6 = sadd.s32 2, %s1232_s24 }
  0xa2   : > { %310 = vst [vmem:[#allocation2 + $0x27] sm:$0x1] %v309_v54  ;;  %s313_s8 = scalar_lea.vmem [#allocation11], %s1228_s27  ;;  %s337_s7 = sld [smem:[#allocation7 + %s336_s6]] }
  0xa3   : > { %v314_v56 = vld [vmem:[%s313_s8] sm:$0x1]  ;;  %s322_s23 = scalar_lea.vmem [#allocation8], %s321_s0  ;;  %s341_s26 = sadd.s32 3, %s1232_s24 }
  0xa4   : > { %315 = vst [vmem:[#allocation2 + $0x28] sm:$0x1] %v314_v56  ;;  %v323_v57 = vld [vmem:[%s322_s23] sm:$0x1]  ;;  %s346_s17 = sadd.s32 4, %s1232_s24  ;;  %s342_s28 = sld [smem:[#allocation7 + %s341_s26]] }
  0xa5   : > { %325 = vst [vmem:[#allocation2 + $0x30] sm:$0x1] %v323_v57  ;;  %s363_s15 = scalar_lea.vmem [#allocation11], %s362_s29  ;;  %s347_s9 = sld [smem:[#allocation7 + %s346_s17]] }
  0xa6   : > { %v364_v58 = vld [vmem:[%s363_s15] sm:$0x1]  ;;  %s328_s27 = scalar_lea.vmem [#allocation11], %s327_s22  ;;  %s351_s10 = sadd.s32 5, %s1232_s24 }
  0xa7   : > { %365 = vst [vmem:[#allocation2 + $0x38] sm:$0x1] %v364_v58  ;;  %v329_v61 = vld [vmem:[%s328_s27] sm:$0x1]  ;;  %s333_s0 = scalar_lea.vmem [#allocation11], %s332_s18  ;;  %s352_s25 = sld [smem:[#allocation7 + %s351_s10]] }
  0xa8   : > { %330 = vst [vmem:[#allocation2 + $0x31] sm:$0x1] %v329_v61  ;;  %v334_v62 = vld [vmem:[%s333_s0] sm:$0x1]  ;;  %s356_s30 = sadd.s32 6, %s1232_s24  ;;  %s338_s29 = scalar_lea.vmem [#allocation11], %s337_s7 }
  0xa9   : > { %335 = vst [vmem:[#allocation2 + $0x32] sm:$0x1] %v334_v62  ;;  %s357_s1 = sld [smem:[#allocation7 + %s356_s30]]  ;;  %v370_v63 = vld [vmem:[#allocation2 + $0x20] sm:$0xff]  ;;  %s164_s8 = sand.u32 1, %s966_s11  }
  0xaa   : > { %v339_v0 = vld [vmem:[%s338_s29] sm:$0x1]  ;;  %v424_v4 = vmul.f32 %v411_v60, %v370_v63  ;;  %s343_s6 = scalar_lea.vmem [#allocation11], %s342_s28  ;;  %s720_s7 = sshll.u32 %s164_s8, 3 }
  0xab   : > { %v371_v5 = vld [vmem:[#allocation2 + $0x28] sm:$0x1]  ;;  %340 = vst [vmem:[#allocation2 + $0x33] sm:$0x1] %v339_v0  ;;  %v344_v8 = vld [vmem:[%s343_s6] sm:$0x1] }
  0xac   : > { %v425_v7 = vmul.f32 %v411_v60, %v371_v5  ;;  %439 = vadd.xlane.f32.xlu0 %v424_v4  ;;  %345 = vst [vmem:[#allocation2 + $0x34] sm:$0x1] %v344_v8  ;;  %s348_s22 = scalar_lea.vmem [#allocation11], %s347_s9  ;;  %s166_s23 = scalar_lea.vmem [#allocation13], %s720_s7 }
  0xad   : > { %v349_v9 = vld [vmem:[%s348_s22] sm:$0x1]  ;;  %s353_s24 = scalar_lea.vmem [#allocation11], %s352_s25  ;;  %s604_s26 = sshll.u32 %s166_s23, 4  ;;  %s1279_s26 = int_to_ptr.vmem [resolvable:$true] %s604_s26 }
  0xae   : > { %v441_v11 = vsel %vm430_vm0, %v425_v7, 0.0  ;;  %v373_v12 = vld [vmem:[#allocation2 + $0x38] sm:$0x1]  ;;  %350 = vst [vmem:[#allocation2 + $0x35] sm:$0x1] %v349_v9  ;;  %s728_s17 = sshll.u32 %s1054_s14, 7 }
  0xaf   : > { %442 = vadd.xlane.f32.xlu1 %v441_v11  ;;  %v427_v13 = vmul.f32 %v415_v6, %v373_v12  ;;  %v354_v14 = vld [vmem:[%s353_s24] sm:$0x1]  ;;  %s358_s18 = scalar_lea.vmem [#allocation11], %s357_s1  ;;  %s1284_s27 = scalar_lea.hbm %s1327_s5, %s728_s17 }
  0xb0   : > { %355 = vst [vmem:[#allocation2 + $0x36] sm:$0x1] %v354_v14  ;;  %v359_v16 = vld [vmem:[%s358_s18] sm:$0x1]  ;;  %s591_s10 = scalar_lea.sflag [#allocation10], %s164_s8  ;;  %s902_s0 = scalar_lea.vmem %s1279_s26, 128 }
  0xb1   : > { %v446_v17 = vsel %vm430_vm0, %v427_v13, 0.0  ;;  %360 = vst [vmem:[#allocation2 + $0x37] sm:$0x1] %v359_v16  ;;  %p903_p11 = scmp.ne.s32.totalorder %s1279_s26, %s902_s0  ;;  %p1346_p9 = scmp.ne.s32.totalorder %s1335_s20, 0 }
  0xb2   : > { %s984_s14 = smov [#allocation13]  }
  0xb3   : > { %447 = vadd.xlane.f32.xlu1 %v446_v17  ;;  %p904_p0 = pnand %p903_p11, %p1346_p9  ;;  %s906_s25 = sshll.u32 %s984_s14, 4  ;;  %s907_s25 = int_to_ptr.vmem [resolvable:$false] %s906_s25 }
  0xb4   : > { %s908_s30 = scalar_lea.vmem %s907_s25, 256  ;;  %p909_p2 = scmp.lt.s32.totalorder %s1279_s26, %s907_s25 }
  0xb5   : > { %p905_p1 = pneg %p904_p0  ;;  %p910_p3 = scmp.lt.s32.totalorder %s908_s30, %s902_s0 }
  0xb7   : > { %p911_p6 = por %p910_p3, %p909_p2 }
  0xb8   : > { %v372_v18 = vld [vmem:[#allocation2 + $0x30] sm:$0xff] }
  0xb9   : > { %v426_v19 = vmul.f32 %v415_v6, %v372_v18  ;;  %p912_p7 = pnand %p911_p6, %p905_p1 }
  0xbb   : > { %444 = vadd.xlane.f32.xlu0 %v426_v19 }
 0x120   : > { %v429_v20 = vpop.xlane.xlu0 %428 }
 0x121   : > { %v452_v22 = vsub.f32 0.0, %v429_v20  ;;  %v471_v25 = vrot.slane %v429_v20, %v1171_v3 }
 0x123   : > { %v524_v31 = vrot.slane %v452_v22, %v1171_v3 }
 0x128   : > { %v435_v21 = vpop.xlane.xlu1 %434 }
 0x129   : > { %v454_v23 = vsub.f32 0.0, %v435_v21  ;;  %v482_v28 = vrot.slane %v435_v21, %v1171_v3 }
 0x12a   : > { %v433_v24 = vpop.xlane.xlu0 %432 }
 0x12b   : > { %v453_v26 = vsub.f32 0.0, %v433_v24  ;;  %v476_v1 = vrot.slane %v433_v24, %v475_v15  ;;  %v533_v34 = vrot.slane %v454_v23, %v1171_v3 }
 0x12c   : > { %v438_v27 = vpop.xlane.xlu1 %437 }
 0x12d   : > { %v455_v29 = vsub.f32 0.0, %v438_v27  ;;  %v486_v30 = vrot.slane %v438_v27, %v475_v15  ;;  %v478_v32 = vsel %vm477_vm1, %v476_v1, %v471_v25  ;;  %v528_v33 = vrot.slane %v453_v26, %v475_v15 }
 0x12f   : > { %v487_v35 = vsel %vm477_vm1, %v486_v30, %v482_v28  ;;  %v537_v36 = vrot.slane %v455_v29, %v475_v15  ;;  %v529_v37 = vsel %vm477_vm1, %v528_v33, %v524_v31 }
 0x130   : > { %v507_v38 = vsel %vm506_vm2, %v487_v35, %v478_v32 }
 0x131   : > { %v538_v39 = vsel %vm477_vm1, %v537_v36, %v533_v34 }
 0x132   : > { %v557_v40 = vsel %vm506_vm2, %v538_v39, %v529_v37 }
 0x139   : > { %v440_v41 = vpop.xlane.xlu0 %439 }
 0x13a   : > { %v456_v42 = vsub.f32 0.0, %v440_v41  ;;  %v491_v43 = vrot.slane %v440_v41, %v1171_v3 }
 0x13c   : > { %v443_v44 = vpop.xlane.xlu1 %442  ;;  %v542_v45 = vrot.slane %v456_v42, %v1171_v3 }
 0x13d   : > { %v457_v46 = vsub.f32 0.0, %v443_v44  ;;  %v495_v47 = vrot.slane %v443_v44, %v475_v15 }
 0x13f   : > { %v496_v48 = vsel %vm477_vm1, %v495_v47, %v491_v43  ;;  %v546_v49 = vrot.slane %v457_v46, %v475_v15 }
 0x140   : > { %v509_v50 = vsel %vm508_vm3, %v496_v48, %v507_v38  ;;  %v448_v52 = vpop.xlane.xlu1 %447 }
 0x141   : > { %v547_v51 = vsel %vm477_vm1, %v546_v49, %v542_v45  ;;  %v459_v54 = vsub.f32 0.0, %v448_v52  ;;  %v504_v55 = vrot.slane %v448_v52, %v475_v15 }
 0x142   : > { %v558_v53 = vsel %vm508_vm3, %v547_v51, %v557_v40 }
 0x143   : > { %v555_v57 = vrot.slane %v459_v54, %v475_v15 }
 0x148   : > { %v445_v56 = vpop.xlane.xlu0 %444 }
 0x149   : > { %v458_v58 = vsub.f32 0.0, %v445_v56  ;;  %v500_v59 = vrot.slane %v445_v56, %v1171_v3 }
 0x14b   : > { %v505_v60 = vsel %vm477_vm1, %v504_v55, %v500_v59  ;;  %v551_v61 = vrot.slane %v458_v58, %v1171_v3 }
 0x14c   : > { %v511_v62 = vsel %vm510_vm4, %v505_v60, %v509_v50 }
 0x14d   : > { %v556_v63 = vsel %vm477_vm1, %v555_v57, %v551_v61 }
 0x14e   : > { %v559_v0 = vsel %vm510_vm4, %v556_v63, %v558_v53 }
 0x14f   : > { %v561_v4 = vsel %vm451_vm5, %v511_v62, %v559_v0 }
 0x150   : > { %v563_v5 = vand.u32 2147483647, %v561_v4  ;;  %v562_v2 = vmin.f32 %v561_v4, 0.0 }
 0x152   : > { %v564_v6 = vsub.f32 0.0, %v563_v5 }
 0x154   : > { %v565_v7 = vmul.f32 1.442695, %v564_v6 }
 0x156   : > { %808 = vpow2.f32 %v565_v7 }
 0x160   : > { %v809_v8 = vpop.eup %808 }
 0x161   : > { %v567_v9 = vadd.f32 1.0, %v809_v8  ;;  %v570_v10 = vmul.f32 -0.5, %v809_v8  ;;  %v573_v12 = vand.u32 2147483647, %v809_v8 }
 0x163   : > { %810 = vlog2.f32 %v567_v9  ;;  %v571_v11 = vadd.f32 1.0, %v570_v10  ;;  %vm574_vm6 = vcmp.lt.f32.partialorder %v573_v12, 0.0004427343 }
 0x165   : > { %v572_v3 = vmul.f32 %v809_v8, %v571_v11 }
 0x16d   : > { %v811_v13 = vpop.eup %810 }
 0x16e   : > { %v569_v14 = vmul.f32 0.6931472, %v811_v13 }
 0x170   : > { %v575_v15 = vsel %vm574_vm6, %v572_v3, %v569_v14 }
 0x171   : > { %v576_v16 = vsub.f32 %v562_v2, %v575_v15 }
 0x173   : > { %v578_v17 = vsel %vm577_vm7, %v576_v16, 0.0 }
 0x174   : > { %579 = vadd.xlane.f32.xlu0 %v578_v17 }
 0x201   : > { %v580_v18 = vpop.xlane.xlu0 %579 }
 0x202   : > { %v581_v19 = vrot.slane %v580_v18, 4 }
 0x204   : > { %v582_v20 = vadd.f32 %v581_v19, %v580_v18 }
 0x206   : > { %v583_v21 = vrot.slane %v582_v20, 2 }
 0x208   : > { %v584_v22 = vadd.f32 %v583_v21, %v582_v20 }
 0x20a   : > { %v585_v23 = vrot.slane %v584_v22, 1 }
 0x20c   : > { %v586_v24 = vadd.f32 %v585_v23, %v584_v22 }
 0x20e   : > { %740 = vpush %v586_v24 }
 0x23f   : > { %s741_s28 = spop %740 }
 0x240   : > { %v588_v25 = vstv %s741_s28 }
 0x241   : > { %589 = vst [vmem:[%s166_s23] sm:$0xff] %v588_v25 }
 0x242   : > { %915 = shalt.err (!%p912_p7)
}
 0x243   : > { %s916_s1 = scalar_lea.hbm %s1284_s27, 128  ;;  %s920_s22 = scalar_lea.hbm %s1327_s5, 256 }
 0x244   : > { %p917_p10 = scmp.ne.s32.totalorder %s1284_s27, %s916_s1  ;;  %p921_p13 = scmp.lt.u32.totalorder %s1284_s27, %s1327_s5 }
 0x245   : > { %p922_p5 = scmp.lt.u32.totalorder %s920_s22, %s916_s1  ;;  %p924_p11 = scmp.lt.u32.totalorder %s916_s1, %s1284_s27 }
 0x246   : > { %p918_p12 = pnand %p917_p10, %p1346_p9 }
 0x247   : > { %p923_p8 = por %p922_p5, %p921_p13 }
 0x248   : > { %p919_p4 = pneg %p918_p12 }
 0x249   : > { %p925_p0 = por %p924_p11, %p923_p8 }
 0x24b   : > { %p926_p1 = pnand %p925_p0, %p919_p4 }
 0x24d   : > { %929 = shalt.err (!%p926_p1)
}
 0x24e   : > { %750 = dma.vmem_to_hbm [thread:$0]  (%p1346_p9), %s1279_s26, 128, %s1284_s27, %s591_s10  }
 0x24f PF: > { %p767_p2 = scmp.ge.s32.totalorder %s974_s13, 2  ;;  %s616_s8 = sand.u32 1, %s962_s2  }
 0x250   : > { %p1347_p3 = scmp.ne.s32.totalorder %s1336_s21, 0  ;;  %s617_s7 = scalar_lea.sflag [#allocation10], %s616_s8 }
 0x252   : > { %p760_p6 = pnand %p767_p2, %p1347_p3 }
 0x254   : > { %957 = dma.done.wait (!%p760_p6), %s617_s7, 128  }
 0x255   : > { %959 = vsyncadd (!%p760_p6), %s617_s7, 4294967168  ;;  %p29_p7 = scmp.ge.s32.totalorder %s1058_s16, 4   ;;  %s1348_s2 = smov %s966_s11 }
 0x256   : > { %s1349_s11 = smov %s970_s12  ;;  %s1350_s12 = smov %s1069_s19 }
 0x257   : > { %s1351_s13 = smov %s1058_s16  ;;  %31 = sbr.rel (!%p29_p7) target bundleno = 38 (0x26), region = 112 }
 0x25e   :  { %622 = vsyncpa [#allocation9], 1 }
 0x25f   :  { %624 = vsyncpa [#allocation9 + $0x1], 1 }
 0x260   :  { %625 = vsyncpa [#allocation12], 1 }
 0x261   :  { %626 = vsyncpa [#allocation10], 1 }
 0x262   :  { %628 = vsyncpa [#allocation10 + $0x1], 1 }

</bundles_post_ra>
